<compile_context>
chip_gen: v6e
topology: v6e:2x2x1
jax: 0.10.0
libtpu: 0.0.40
codegen_flags: <defaults>
</compile_context>

<pallas_src>
import math

import jax
import jax.numpy as jnp
from jax.experimental import pallas as pl
from jax.experimental.pallas import tpu as pltpu

# ---------------- small-model hyper-parameters (scaled-down OneDUnet) --------
B = 2            # batch
T = 8            # sequence length of x
XT_DIM = 128     # latent_dim / xt_dim (torch default 8000)
COND_DIM = 128   # text_latent_dim == cond spatial length (torch default 8000)
TIME_DIM = 32    # xt_dim // 4
FFN_DIM = 64     # ffn_dim
NUM_HEAD = 2     # unused after the exact attention fold (heads concat back to D)
MAX_STEPS = 200
COND_CH = 16     # PointEncoder input_channels (torch default 272)
HID_CH = 8       # PointEncoder hidden_channels (torch default 128)
NUM_LAYERS = 1
HALF = XT_DIM // 2

CONV_CHANS = (COND_CH, HID_CH, HID_CH, HID_CH // 2, 3, 1)
CONV_MAXC = 8    # row stride of each conv layer inside the packed conv weight slot

# ---- indices into the (10, 128, 128) bf16 weight stack --------------------
(W_JOINT, W_CAV, W_CAO, W_FFN1, W_FFN2, W_FFNO, W_OUT,
 W_TW1, W_TW2, W_CONV) = range(10)

# ---- row indices of the (25, 128) f32 parameter slab ----------------------
LN_CAX, LN_CAT, LN_CAST, LN_FFNST, LN_OUT = 0, 2, 4, 6, 8   # gamma rows; beta = +1
(R_B_JOINT, R_B_V, R_B_CAO, R_B_FFN1, R_B_FFN2, R_B_FFNO, R_B_OUT) = range(10, 17)
R_TB1, R_TB2, R_FREQ2, R_PHASE = 17, 18, 19, 20
R_B_CAS, R_B_CASH, R_B_FFS, R_B_FFSH = 21, 22, 23, 24
SLAB_ROWS = 25


# ----------------------------- in-kernel helpers -----------------------------
def _silu(x):
    return x * jax.nn.sigmoid(x)


def _layernorm(v, g, b, eps=1e-5):
    # One-pass variance (E[x^2] - E[x]^2): the two lane reductions are
    # independent instead of mean -> centered-square -> mean being serial.
    mu = jnp.mean(v, axis=-1, keepdims=True)
    ms = jnp.mean(v * v, axis=-1, keepdims=True)
    return (v - mu) * jax.lax.rsqrt(ms - mu * mu + eps) * g + b


def _expand_rows(a, reps):
    """(B, C) -> (B*reps, C): each row repeated `reps` times (sublane broadcast)."""
    rows = [jnp.broadcast_to(a[i:i + 1], (reps, a.shape[-1])) for i in range(a.shape[0])]
    return jnp.concatenate(rows, axis=0)


# --------------------------------- fused kernel ------------------------------
def _unet_kernel(ts_ref, x_ref, cond_ref, w128_ref, stwe_ref, slab_ref, o_ref):
    """Full OneDUnet forward for the whole (small) batch in one invocation."""
    bf16, f32 = jnp.bfloat16, jnp.float32
    slab = slab_ref[...]                                     # (25, 128) f32

    def srow(i):
        return slab[i:i + 1]                                 # (1, 128)

    def dot(a, w_idx):
        # bf16 MXU operands, f32 accumulation.
        return jnp.dot(a.astype(bf16), w128_ref[w_idx], preferred_element_type=f32)

    # --- time_embed(timestep_embedding(t)): sinusoid -> Linear -> SiLU -> Linear
    # temb = [cos(t*f) | sin(t*f)] built as cos(t*[f|f] + [0|-pi/2]) -> no lane
    # slicing / concat of half-tiles.
    freqs2, phase = srow(R_FREQ2), srow(R_PHASE)
    targ = jnp.concatenate([ts_ref[b] * freqs2 for b in range(B)], axis=0) + phase
    temb = jnp.cos(targ)                                     # (B, 128)
    h0 = dot(temb, W_TW1) + srow(R_TB1)                      # time weights padded to 128
    emb = dot(_silu(h0), W_TW2) + srow(R_TB2)                # (B, 128); cols >= 32 are 0
    se = _silu(emb)                                          # hoisted SiLU(emb)

    # --- fused StylizationBlock emb projections: one (B,128)@(128,512) dot.
    eo = jnp.dot(se.astype(bf16), stwe_ref[...], preferred_element_type=f32)  # (B, 512)
    ca_scale = _expand_rows(eo[:, 0 * XT_DIM:1 * XT_DIM] + srow(R_B_CAS), T)
    ca_shift = _expand_rows(eo[:, 1 * XT_DIM:2 * XT_DIM] + srow(R_B_CASH), T)
    ffn_scale = _expand_rows(eo[:, 2 * XT_DIM:3 * XT_DIM] + srow(R_B_FFS), T)
    ffn_shift = _expand_rows(eo[:, 3 * XT_DIM:4 * XT_DIM] + srow(R_B_FFSH), T)

    # --- joint_embed(x): both samples batched as (B*T, 128) rows
    h = dot(x_ref[...], W_JOINT) + srow(R_B_JOINT)

    # --- pointencoder(cond): 5x Conv1d(k=3,s=1,p=1) per sample, SiLU between.
    # im2col on the MXU; bias folded in via a ones row + bias column.
    cw = w128_ref[W_CONV]                                    # (128, 128) bf16 packed
    L = COND_DIM
    lane = jax.lax.broadcasted_iota(jnp.int32, (1, L), 1)
    mask_l = (lane > 0).astype(f32)                          # zero-pad at j == 0
    mask_r = (lane < L - 1).astype(f32)                      # zero-pad at j == L-1
    ones_row = jnp.ones((1, L), f32)
    xf_rows = []
    for b in range(B):
        hc = cond_ref[b]                                     # (C0, L) f32
        for l in range(5):
            cin, cout = CONV_CHANS[l], CONV_CHANS[l + 1]
            left = mask_l * pltpu.roll(hc, shift=1, axis=1)        # x[j-1]
            right = mask_r * pltpu.roll(hc, shift=L - 1, axis=1)   # x[j+1]
            stacked = jnp.concatenate([left, hc, right, ones_row], axis=0)  # (3cin+1, L)
            w_l = cw[CONV_MAXC * l:CONV_MAXC * l + cout, :3 * cin + 1]      # (cout, 3cin+1)
            hc = jnp.dot(w_l, stacked.astype(bf16), preferred_element_type=f32)
            if l < 4:
                hc = _silu(hc)
        xf_rows.append(hc)                                   # (1, L): cond_embed, N == 1
    xf = jnp.concatenate(xf_rows, axis=0)                    # (B, L)

    # --- cross-attention: only the V projection survives the exact fold.
    # softmax(key) over the length-1 key axis is identically 1, and softmax(q)
    # rows sum to 1, so y == broadcast(value) over T (per head, hence overall).
    xfn = _layernorm(xf, srow(LN_CAT), srow(LN_CAT + 1))
    v_all = dot(xfn, W_CAV) + srow(R_B_V)                    # (B, 128)
    y_ca = _expand_rows(v_all, T)                            # (B*T, 128)

    # --- CA StylizationBlock addend: loop-invariant (depends only on v, emb).
    hh = _layernorm(y_ca, srow(LN_CAST), srow(LN_CAST + 1)) * (1.0 + ca_scale) + ca_shift
    ca_add = dot(_silu(hh), W_CAO) + srow(R_B_CAO)

    for _ in range(NUM_LAYERS):                              # torch shares one module instance
        h = h + ca_add
        # ---- FFN (hidden dim zero-padded to 128 at pre-pack time -> exact)
        hm = dot(h, W_FFN1) + srow(R_B_FFN1)
        # TODO(synk): torch nn.GELU() default is exact erf GELU; tanh approximation used here.
        hm = jax.nn.gelu(hm, approximate=True)
        y2 = dot(hm, W_FFN2) + srow(R_B_FFN2)
        hh2 = (_layernorm(y2, srow(LN_FFNST), srow(LN_FFNST + 1))
               * (1.0 + ffn_scale) + ffn_shift)
        h = h + dot(_silu(hh2), W_FFNO) + srow(R_B_FFNO)

    # --- out head: LayerNorm -> Linear -> Sigmoid
    hn = _layernorm(h, srow(LN_OUT), srow(LN_OUT + 1))
    o_ref[...] = jax.nn.sigmoid(dot(hn, W_OUT) + srow(R_B_OUT))


# ------------------------------ pallas wrapper --------------------------------
def one_d_unet_forward(pk, x, time_steps, cond):
    bsz, t_, d_ = x.shape
    assert (bsz, t_, d_) == (B, T, XT_DIM)
    x2 = x.reshape(bsz * t_, d_)                 # layout plumbing only (free reshape)
    ts = time_steps.astype(jnp.float32)          # (B,) scalars -> SMEM
    vmem = pltpu.MemorySpace.VMEM
    out = pl.pallas_call(
        _unet_kernel,
        out_shape=jax.ShapeDtypeStruct((bsz * t_, d_), jnp.float32),
        in_specs=[
            pl.BlockSpec(memory_space=pltpu.MemorySpace.SMEM),   # timesteps (scalars)
            pl.BlockSpec(memory_space=vmem),                     # x           (B*T, 128)
            pl.BlockSpec(memory_space=vmem),                     # cond        (B, C0, L)
            pl.BlockSpec(memory_space=vmem),                     # w128 stack  (10,128,128) bf16
            pl.BlockSpec(memory_space=vmem),                     # fused styl. (128,512) bf16
            pl.BlockSpec(memory_space=vmem),                     # param slab  (25,128) f32
        ],
        out_specs=pl.BlockSpec(memory_space=vmem),
        # No grid: single invocation, everything VMEM-resident (<1 MiB); no
        # vmem_limit tuning needed on any generation.
    )(ts, x2, cond, pk['w128'], pk['stwe'], pk['slab'])
    return out.reshape(bsz, t_, d_)


# ----------------------------- parameters ------------------------------------
def init_params(key):
    keys = iter(jax.random.split(key, 64))
    p = {}

    def lin(fan_in, fan_out):
        k1, k2 = jax.random.split(next(keys))
        bound = 1.0 / math.sqrt(fan_in)
        w = jax.random.uniform(k1, (fan_in, fan_out), jnp.float32, -bound, bound)
        b = jax.random.uniform(k2, (1, fan_out), jnp.float32, -bound, bound)
        return w, b

    def conv(cin, cout):
        k1, k2 = jax.random.split(next(keys))
        bound = 1.0 / math.sqrt(cin * 3)
        w = jax.random.uniform(k1, (cout, cin, 3), jnp.float32, -bound, bound)
        b = jax.random.uniform(k2, (cout,), jnp.float32, -bound, bound)
        return w, b

    # time_embed: Linear(xt, time) -> SiLU -> Linear(time, time)
    p['time_w1'], p['time_b1'] = lin(XT_DIM, TIME_DIM)
    p['time_w2'], p['time_b2'] = lin(TIME_DIM, TIME_DIM)
    # joint_embed
    p['joint_w'], p['joint_b'] = lin(XT_DIM, XT_DIM)
    # PointEncoder: Cin -> hid -> hid -> hid/2 -> 3 -> 1  (SiLU after all but last)
    p['pointencoder'] = [conv(CONV_CHANS[i], CONV_CHANS[i + 1]) for i in range(5)]
    # LinearTemporalCrossAttention (query/key params exist in torch but are
    # provably dead in the forward: the attention output folds to broadcast(v)).
    p['ca_ln_x_g'] = jnp.ones((1, XT_DIM)); p['ca_ln_x_b'] = jnp.zeros((1, XT_DIM))
    p['ca_ln_t_g'] = jnp.ones((1, COND_DIM)); p['ca_ln_t_b'] = jnp.zeros((1, COND_DIM))
    p['ca_wq'], p['ca_bq'] = lin(XT_DIM, XT_DIM)          # dead (exact fold)
    p['ca_wk'], p['ca_bk'] = lin(COND_DIM, XT_DIM)        # dead (exact fold)
    p['ca_wv'], p['ca_bv'] = lin(COND_DIM, XT_DIM)
    p['ca_st_we'], p['ca_st_be'] = lin(TIME_DIM, 2 * XT_DIM)
    p['ca_st_ln_g'] = jnp.ones((1, XT_DIM)); p['ca_st_ln_b'] = jnp.zeros((1, XT_DIM))
    # NOTE: torch zero_module() zero-inits this linear; we use nonzero weights
    # to exercise the full compute path of the synthetic kernel.
    p['ca_st_wo'], p['ca_st_bo'] = lin(XT_DIM, XT_DIM)
    # FFN
    p['ffn_w1'], p['ffn_b1'] = lin(XT_DIM, FFN_DIM)
    p['ffn_w2'], p['ffn_b2'] = lin(FFN_DIM, XT_DIM)       # zero_module in torch
    p['ffn_st_we'], p['ffn_st_be'] = lin(TIME_DIM, 2 * XT_DIM)
    p['ffn_st_ln_g'] = jnp.ones((1, XT_DIM)); p['ffn_st_ln_b'] = jnp.zeros((1, XT_DIM))
    p['ffn_st_wo'], p['ffn_st_bo'] = lin(XT_DIM, XT_DIM)
    # out head: LayerNorm -> Linear -> Sigmoid
    p['out_ln_g'] = jnp.ones((1, XT_DIM)); p['out_ln_b'] = jnp.zeros((1, XT_DIM))
    p['out_w'], p['out_b'] = lin(XT_DIM, XT_DIM)
    return p


def prepack_params(p):
    """One-time packing: fold reshapes / pads / transposes / dtype casts out of the forward."""
    d = XT_DIM
    f32 = jnp.float32

    # --- 128x128 (padded) weight stack, bf16 for the MXU ---------------------
    ffn_w1 = jnp.pad(p['ffn_w1'], ((0, 0), (0, d - FFN_DIM)))
    ffn_w2 = jnp.pad(p['ffn_w2'], ((0, d - FFN_DIM), (0, 0)))
    tw1 = jnp.pad(p['time_w1'], ((0, 0), (0, d - TIME_DIM)))
    tw2 = jnp.pad(p['time_w2'], ((0, d - TIME_DIM), (0, d - TIME_DIM)))
    # Packed conv im2col weights (+ bias column) in one 128x128 slot.
    conv_slot = jnp.zeros((d, d), f32)
    for l, (w, b) in enumerate(p['pointencoder']):
        cout, cin, _ = w.shape
        # column k*cin + c multiplies tap k of input channel c; column 3*cin is the bias.
        w_im = jnp.transpose(w, (0, 2, 1)).reshape(cout, 3 * cin)
        conv_slot = conv_slot.at[CONV_MAXC * l:CONV_MAXC * l + cout, :3 * cin].set(w_im)
        conv_slot = conv_slot.at[CONV_MAXC * l:CONV_MAXC * l + cout, 3 * cin].set(b)
    w128 = jnp.stack([p['joint_w'], p['ca_wv'], p['ca_st_wo'], ffn_w1, ffn_w2,
                      p['ffn_st_wo'], p['out_w'], tw1, tw2, conv_slot]
                     ).astype(jnp.bfloat16)                                  # (10,128,128)

    # --- fused StylizationBlock emb weights: [ca_scale|ca_shift|ffn_scale|ffn_shift]
    stwe = jnp.concatenate([p['ca_st_we'], p['ffn_st_we']], axis=1)          # (32, 512)
    stwe = jnp.pad(stwe, ((0, d - TIME_DIM), (0, 0))).astype(jnp.bfloat16)   # (128, 512)

    # --- f32 parameter slab (LayerNorms, biases, sinusoid tables) ------------
    ffn_b1 = jnp.pad(p['ffn_b1'], ((0, 0), (0, d - FFN_DIM)))
    tb1 = jnp.pad(p['time_b1'], ((0, 0), (0, d - TIME_DIM)))
    tb2 = jnp.pad(p['time_b2'], ((0, 0), (0, d - TIME_DIM)))
    freqs = jnp.exp(-math.log(MAX_STEPS) * jnp.arange(HALF, dtype=f32) / HALF)
    freqs2 = jnp.concatenate([freqs, freqs]).reshape(1, d)                   # [f | f]
    phase = jnp.concatenate([jnp.zeros((HALF,), f32),
                             jnp.full((HALF,), -0.5 * math.pi, f32)]).reshape(1, d)
    slab = jnp.concatenate([
        p['ca_ln_x_g'], p['ca_ln_x_b'],
        p['ca_ln_t_g'], p['ca_ln_t_b'],
        p['ca_st_ln_g'], p['ca_st_ln_b'],
        p['ffn_st_ln_g'], p['ffn_st_ln_b'],
        p['out_ln_g'], p['out_ln_b'],
        p['joint_b'], p['ca_bv'], p['ca_st_bo'], ffn_b1, p['ffn_b2'],
        p['ffn_st_bo'], p['out_b'],
        tb1, tb2, freqs2, phase,
        p['ca_st_be'][:, :d], p['ca_st_be'][:, d:],
        p['ffn_st_be'][:, :d], p['ffn_st_be'][:, d:],
    ], axis=0).astype(f32)
    assert slab.shape == (SLAB_ROWS, d), slab.shape

    return dict(w128=w128, stwe=stwe, slab=slab)


if __name__ == "__main__":
    key = jax.random.PRNGKey(0)
    kp, kx, kc, kt = jax.random.split(key, 4)
    params = init_params(kp)
    packed = prepack_params(params)

    x = jax.random.normal(kx, (B, T, XT_DIM), jnp.float32)
    cond = jax.random.normal(kc, (B, COND_CH, COND_DIM), jnp.float32)
    time_steps = jax.random.randint(kt, (B,), 0, MAX_STEPS).astype(jnp.float32)

    fwd = jax.jit(one_d_unet_forward)
    out = jax.block_until_ready(fwd(packed, x, time_steps, cond))
    assert out.shape == (B, T, XT_DIM), out.shape
    assert bool(jnp.all(jnp.isfinite(out)))
    print("KERNEL_OK")
</pallas_src>

<mosaic_0001>
module attributes {stable_mosaic.version = 11 : i64} {
  func.func @_unet_kernel(%arg0: memref<2xf32, #tpu.memory_space<smem>>, %arg1: memref<16x128xf32, #tpu.memory_space<vmem>>, %arg2: memref<2x16x128xf32, #tpu.memory_space<vmem>>, %arg3: memref<10x128x128xbf16, #tpu.memory_space<vmem>>, %arg4: memref<128x512xbf16, #tpu.memory_space<vmem>>, %arg5: memref<25x128xf32, #tpu.memory_space<vmem>>, %arg6: memref<16x128xf32, #tpu.memory_space<vmem>>) attributes {dimension_semantics = [], scalar_prefetch = 0 : i64, scratch_operands = 0 : i64, tpu.core_type = #tpu.core_type<tc>} {
    %c0 = arith.constant 0 : index
    %c0_0 = arith.constant 0 : index
    %0 = vector.load %arg5[%c0, %c0_0] : memref<25x128xf32, #tpu.memory_space<vmem>>, vector<25x128xf32>
    %1 = vector.extract_strided_slice %0 {offsets = [19, 0], sizes = [1, 128], strides = [1, 1]} : vector<25x128xf32> to vector<1x128xf32>
    %2 = vector.extract_strided_slice %0 {offsets = [20, 0], sizes = [1, 128], strides = [1, 1]} : vector<25x128xf32> to vector<1x128xf32>
    %c0_1 = arith.constant 0 : index
    %3 = memref.load %arg0[%c0_1] : memref<2xf32, #tpu.memory_space<smem>>
    %4 = vector.broadcast %3 : f32 to vector<1x128xf32>
    %5 = arith.mulf %4, %1 : vector<1x128xf32>
    %c1 = arith.constant 1 : index
    %6 = memref.load %arg0[%c1] : memref<2xf32, #tpu.memory_space<smem>>
    %7 = vector.broadcast %6 : f32 to vector<1x128xf32>
    %8 = arith.mulf %7, %1 : vector<1x128xf32>
    %9 = tpu.concatenate %5, %8 in 0 : vector<1x128xf32>, vector<1x128xf32> -> vector<2x128xf32>
    %10 = vector.broadcast %2 : vector<1x128xf32> to vector<2x128xf32>
    %11 = arith.addf %9, %10 : vector<2x128xf32>
    %12 = math.cos %11 : vector<2x128xf32>
    %13 = arith.truncf %12 : vector<2x128xf32> to vector<2x128xbf16>
    %c7 = arith.constant 7 : index
    %c0_2 = arith.constant 0 : index
    %c0_3 = arith.constant 0 : index
    %14 = vector.load %arg3[%c7, %c0_2, %c0_3] : memref<10x128x128xbf16, #tpu.memory_space<vmem>>, vector<1x128x128xbf16>
    %15 = vector.shape_cast %14 : vector<1x128x128xbf16> to vector<128x128xbf16>
    %cst = arith.constant dense<0.000000e+00> : vector<2x128xf32>
    %16 = tpu.matmul %13, %15, %cst {dimension_numbers = #tpu.dot_dimension_numbers<[1], [0], [0], [1], [0, 0, 1, 1], [], []>} : vector<2x128xbf16>, vector<128x128xbf16>, vector<2x128xf32> -> vector<2x128xf32>
    %17 = vector.extract_strided_slice %0 {offsets = [17, 0], sizes = [1, 128], strides = [1, 1]} : vector<25x128xf32> to vector<1x128xf32>
    %18 = vector.broadcast %17 : vector<1x128xf32> to vector<2x128xf32>
    %19 = arith.addf %16, %18 : vector<2x128xf32>
    %20 = arith.negf %19 : vector<2x128xf32>
    %21 = math.exp %20 : vector<2x128xf32>
    %cst_4 = arith.constant 1.000000e+00 : f32
    %22 = vector.broadcast %cst_4 : f32 to vector<2x128xf32>
    %23 = arith.addf %22, %21 : vector<2x128xf32>
    %24 = arith.divf %22, %23 : vector<2x128xf32>
    %25 = arith.mulf %19, %24 : vector<2x128xf32>
    %26 = arith.truncf %25 : vector<2x128xf32> to vector<2x128xbf16>
    %c8 = arith.constant 8 : index
    %c0_5 = arith.constant 0 : index
    %c0_6 = arith.constant 0 : index
    %27 = vector.load %arg3[%c8, %c0_5, %c0_6] : memref<10x128x128xbf16, #tpu.memory_space<vmem>>, vector<1x128x128xbf16>
    %28 = vector.shape_cast %27 : vector<1x128x128xbf16> to vector<128x128xbf16>
    %cst_7 = arith.constant dense<0.000000e+00> : vector<2x128xf32>
    %29 = tpu.matmul %26, %28, %cst_7 {dimension_numbers = #tpu.dot_dimension_numbers<[1], [0], [0], [1], [0, 0, 1, 1], [], []>} : vector<2x128xbf16>, vector<128x128xbf16>, vector<2x128xf32> -> vector<2x128xf32>
    %30 = vector.extract_strided_slice %0 {offsets = [18, 0], sizes = [1, 128], strides = [1, 1]} : vector<25x128xf32> to vector<1x128xf32>
    %31 = vector.broadcast %30 : vector<1x128xf32> to vector<2x128xf32>
    %32 = arith.addf %29, %31 : vector<2x128xf32>
    %33 = arith.negf %32 : vector<2x128xf32>
    %34 = math.exp %33 : vector<2x128xf32>
    %cst_8 = arith.constant 1.000000e+00 : f32
    %35 = vector.broadcast %cst_8 : f32 to vector<2x128xf32>
    %36 = arith.addf %35, %34 : vector<2x128xf32>
    %37 = arith.divf %35, %36 : vector<2x128xf32>
    %38 = arith.mulf %32, %37 : vector<2x128xf32>
    %39 = arith.truncf %38 : vector<2x128xf32> to vector<2x128xbf16>
    %c0_9 = arith.constant 0 : index
    %c0_10 = arith.constant 0 : index
    %40 = vector.load %arg4[%c0_9, %c0_10] : memref<128x512xbf16, #tpu.memory_space<vmem>>, vector<128x512xbf16>
    %cst_11 = arith.constant dense<0.000000e+00> : vector<2x512xf32>
    %41 = tpu.matmul %39, %40, %cst_11 {dimension_numbers = #tpu.dot_dimension_numbers<[1], [0], [0], [1], [0, 0, 1, 1], [], []>} : vector<2x128xbf16>, vector<128x512xbf16>, vector<2x512xf32> -> vector<2x512xf32>
    %42 = vector.extract_strided_slice %41 {offsets = [0, 0], sizes = [2, 128], strides = [1, 1]} : vector<2x512xf32> to vector<2x128xf32>
    %43 = vector.extract_strided_slice %0 {offsets = [21, 0], sizes = [1, 128], strides = [1, 1]} : vector<25x128xf32> to vector<1x128xf32>
    %44 = vector.broadcast %43 : vector<1x128xf32> to vector<2x128xf32>
    %45 = arith.addf %42, %44 : vector<2x128xf32>
    %46 = vector.extract_strided_slice %45 {offsets = [0, 0], sizes = [1, 128], strides = [1, 1]} : vector<2x128xf32> to vector<1x128xf32>
    %47 = vector.shape_cast %46 : vector<1x128xf32> to vector<1x128xf32>
    %48 = vector.broadcast %47 : vector<1x128xf32> to vector<8x128xf32>
    %49 = vector.extract_strided_slice %45 {offsets = [1, 0], sizes = [1, 128], strides = [1, 1]} : vector<2x128xf32> to vector<1x128xf32>
    %50 = vector.shape_cast %49 : vector<1x128xf32> to vector<1x128xf32>
    %51 = vector.broadcast %50 : vector<1x128xf32> to vector<8x128xf32>
    %52 = tpu.concatenate %48, %51 in 0 : vector<8x128xf32>, vector<8x128xf32> -> vector<16x128xf32>
    %53 = vector.extract_strided_slice %41 {offsets = [0, 128], sizes = [2, 128], strides = [1, 1]} : vector<2x512xf32> to vector<2x128xf32>
    %54 = vector.extract_strided_slice %0 {offsets = [22, 0], sizes = [1, 128], strides = [1, 1]} : vector<25x128xf32> to vector<1x128xf32>
    %55 = vector.broadcast %54 : vector<1x128xf32> to vector<2x128xf32>
    %56 = arith.addf %53, %55 : vector<2x128xf32>
    %57 = vector.extract_strided_slice %56 {offsets = [0, 0], sizes = [1, 128], strides = [1, 1]} : vector<2x128xf32> to vector<1x128xf32>
    %58 = vector.shape_cast %57 : vector<1x128xf32> to vector<1x128xf32>
    %59 = vector.broadcast %58 : vector<1x128xf32> to vector<8x128xf32>
    %60 = vector.extract_strided_slice %56 {offsets = [1, 0], sizes = [1, 128], strides = [1, 1]} : vector<2x128xf32> to vector<1x128xf32>
    %61 = vector.shape_cast %60 : vector<1x128xf32> to vector<1x128xf32>
    %62 = vector.broadcast %61 : vector<1x128xf32> to vector<8x128xf32>
    %63 = tpu.concatenate %59, %62 in 0 : vector<8x128xf32>, vector<8x128xf32> -> vector<16x128xf32>
    %64 = vector.extract_strided_slice %41 {offsets = [0, 256], sizes = [2, 128], strides = [1, 1]} : vector<2x512xf32> to vector<2x128xf32>
    %65 = vector.extract_strided_slice %0 {offsets = [23, 0], sizes = [1, 128], strides = [1, 1]} : vector<25x128xf32> to vector<1x128xf32>
    %66 = vector.broadcast %65 : vector<1x128xf32> to vector<2x128xf32>
    %67 = arith.addf %64, %66 : vector<2x128xf32>
    %68 = vector.extract_strided_slice %67 {offsets = [0, 0], sizes = [1, 128], strides = [1, 1]} : vector<2x128xf32> to vector<1x128xf32>
    %69 = vector.shape_cast %68 : vector<1x128xf32> to vector<1x128xf32>
    %70 = vector.broadcast %69 : vector<1x128xf32> to vector<8x128xf32>
    %71 = vector.extract_strided_slice %67 {offsets = [1, 0], sizes = [1, 128], strides = [1, 1]} : vector<2x128xf32> to vector<1x128xf32>
    %72 = vector.shape_cast %71 : vector<1x128xf32> to vector<1x128xf32>
    %73 = vector.broadcast %72 : vector<1x128xf32> to vector<8x128xf32>
    %74 = tpu.concatenate %70, %73 in 0 : vector<8x128xf32>, vector<8x128xf32> -> vector<16x128xf32>
    %75 = vector.extract_strided_slice %41 {offsets = [0, 384], sizes = [2, 128], strides = [1, 1]} : vector<2x512xf32> to vector<2x128xf32>
    %76 = vector.extract_strided_slice %0 {offsets = [24, 0], sizes = [1, 128], strides = [1, 1]} : vector<25x128xf32> to vector<1x128xf32>
    %77 = vector.broadcast %76 : vector<1x128xf32> to vector<2x128xf32>
    %78 = arith.addf %75, %77 : vector<2x128xf32>
    %79 = vector.extract_strided_slice %78 {offsets = [0, 0], sizes = [1, 128], strides = [1, 1]} : vector<2x128xf32> to vector<1x128xf32>
    %80 = vector.shape_cast %79 : vector<1x128xf32> to vector<1x128xf32>
    %81 = vector.broadcast %80 : vector<1x128xf32> to vector<8x128xf32>
    %82 = vector.extract_strided_slice %78 {offsets = [1, 0], sizes = [1, 128], strides = [1, 1]} : vector<2x128xf32> to vector<1x128xf32>
    %83 = vector.shape_cast %82 : vector<1x128xf32> to vector<1x128xf32>
    %84 = vector.broadcast %83 : vector<1x128xf32> to vector<8x128xf32>
    %85 = tpu.concatenate %81, %84 in 0 : vector<8x128xf32>, vector<8x128xf32> -> vector<16x128xf32>
    %c0_12 = arith.constant 0 : index
    %c0_13 = arith.constant 0 : index
    %86 = vector.load %arg1[%c0_12, %c0_13] : memref<16x128xf32, #tpu.memory_space<vmem>>, vector<16x128xf32>
    %87 = arith.truncf %86 : vector<16x128xf32> to vector<16x128xbf16>
    %c0_14 = arith.constant 0 : index
    %c0_15 = arith.constant 0 : index
    %c0_16 = arith.constant 0 : index
    %88 = vector.load %arg3[%c0_14, %c0_15, %c0_16] : memref<10x128x128xbf16, #tpu.memory_space<vmem>>, vector<1x128x128xbf16>
    %89 = vector.shape_cast %88 : vector<1x128x128xbf16> to vector<128x128xbf16>
    %cst_17 = arith.constant dense<0.000000e+00> : vector<16x128xf32>
    %90 = tpu.matmul %87, %89, %cst_17 {dimension_numbers = #tpu.dot_dimension_numbers<[1], [0], [0], [1], [0, 0, 1, 1], [], []>} : vector<16x128xbf16>, vector<128x128xbf16>, vector<16x128xf32> -> vector<16x128xf32>
    %91 = vector.extract_strided_slice %0 {offsets = [10, 0], sizes = [1, 128], strides = [1, 1]} : vector<25x128xf32> to vector<1x128xf32>
    %92 = vector.broadcast %91 : vector<1x128xf32> to vector<16x128xf32>
    %93 = arith.addf %90, %92 : vector<16x128xf32>
    %c9 = arith.constant 9 : index
    %c0_18 = arith.constant 0 : index
    %c0_19 = arith.constant 0 : index
    %94 = vector.load %arg3[%c9, %c0_18, %c0_19] : memref<10x128x128xbf16, #tpu.memory_space<vmem>>, vector<1x128x128xbf16>
    %95 = vector.shape_cast %94 : vector<1x128x128xbf16> to vector<128x128xbf16>
    %96 = tpu.iota {dimensions = array<i32: 1>} : vector<1x128xi32>
    %c0_i32 = arith.constant 0 : i32
    %97 = vector.broadcast %c0_i32 : i32 to vector<1x128xi32>
    %98 = arith.cmpi sgt, %96, %97 : vector<1x128xi32>
    %99 = arith.extui %98 : vector<1x128xi1> to vector<1x128xi32>
    %100 = arith.sitofp %99 : vector<1x128xi32> to vector<1x128xf32>
    %c127_i32 = arith.constant 127 : i32
    %101 = vector.broadcast %c127_i32 : i32 to vector<1x128xi32>
    %102 = arith.cmpi slt, %96, %101 : vector<1x128xi32>
    %103 = arith.extui %102 : vector<1x128xi1> to vector<1x128xi32>
    %104 = arith.sitofp %103 : vector<1x128xi32> to vector<1x128xf32>
    %cst_20 = arith.constant 1.000000e+00 : f32
    %105 = vector.broadcast %cst_20 : f32 to vector<1x128xf32>
    %c0_21 = arith.constant 0 : index
    %c0_22 = arith.constant 0 : index
    %c0_23 = arith.constant 0 : index
    %106 = vector.load %arg2[%c0_21, %c0_22, %c0_23] : memref<2x16x128xf32, #tpu.memory_space<vmem>>, vector<1x16x128xf32>
    %107 = vector.shape_cast %106 : vector<1x16x128xf32> to vector<16x128xf32>
    %c1_i32 = arith.constant 1 : i32
    %108 = tpu.dynamic_rotate %107 by %c1_i32 dim 1 : vector<16x128xf32>, i32 -> vector<16x128xf32>
    %109 = vector.broadcast %100 : vector<1x128xf32> to vector<16x128xf32>
    %110 = arith.mulf %109, %108 : vector<16x128xf32>
    %c127_i32_24 = arith.constant 127 : i32
    %111 = tpu.dynamic_rotate %107 by %c127_i32_24 dim 1 : vector<16x128xf32>, i32 -> vector<16x128xf32>
    %112 = vector.broadcast %104 : vector<1x128xf32> to vector<16x128xf32>
    %113 = arith.mulf %112, %111 : vector<16x128xf32>
    %114 = tpu.concatenate %110, %107, %113, %105 in 0 : vector<16x128xf32>, vector<16x128xf32>, vector<16x128xf32>, vector<1x128xf32> -> vector<49x128xf32>
    %115 = vector.extract_strided_slice %95 {offsets = [0, 0], sizes = [8, 49], strides = [1, 1]} : vector<128x128xbf16> to vector<8x49xbf16>
    %116 = arith.truncf %114 : vector<49x128xf32> to vector<49x128xbf16>
    %cst_25 = arith.constant dense<0.000000e+00> : vector<8x128xf32>
    %117 = tpu.matmul %115, %116, %cst_25 {dimension_numbers = #tpu.dot_dimension_numbers<[1], [0], [0], [1], [0, 0, 1, 1], [], []>} : vector<8x49xbf16>, vector<49x128xbf16>, vector<8x128xf32> -> vector<8x128xf32>
    %118 = arith.negf %117 : vector<8x128xf32>
    %119 = math.exp %118 : vector<8x128xf32>
    %cst_26 = arith.constant 1.000000e+00 : f32
    %120 = vector.broadcast %cst_26 : f32 to vector<8x128xf32>
    %121 = arith.addf %120, %119 : vector<8x128xf32>
    %122 = arith.divf %120, %121 : vector<8x128xf32>
    %123 = arith.mulf %117, %122 : vector<8x128xf32>
    %c1_i32_27 = arith.constant 1 : i32
    %124 = tpu.dynamic_rotate %123 by %c1_i32_27 dim 1 : vector<8x128xf32>, i32 -> vector<8x128xf32>
    %125 = vector.broadcast %100 : vector<1x128xf32> to vector<8x128xf32>
    %126 = arith.mulf %125, %124 : vector<8x128xf32>
    %c127_i32_28 = arith.constant 127 : i32
    %127 = tpu.dynamic_rotate %123 by %c127_i32_28 dim 1 : vector<8x128xf32>, i32 -> vector<8x128xf32>
    %128 = vector.broadcast %104 : vector<1x128xf32> to vector<8x128xf32>
    %129 = arith.mulf %128, %127 : vector<8x128xf32>
    %130 = tpu.concatenate %126, %123, %129, %105 in 0 : vector<8x128xf32>, vector<8x128xf32>, vector<8x128xf32>, vector<1x128xf32> -> vector<25x128xf32>
    %131 = vector.extract_strided_slice %95 {offsets = [8, 0], sizes = [8, 25], strides = [1, 1]} : vector<128x128xbf16> to vector<8x25xbf16>
    %132 = arith.truncf %130 : vector<25x128xf32> to vector<25x128xbf16>
    %cst_29 = arith.constant dense<0.000000e+00> : vector<8x128xf32>
    %133 = tpu.matmul %131, %132, %cst_29 {dimension_numbers = #tpu.dot_dimension_numbers<[1], [0], [0], [1], [0, 0, 1, 1], [], []>} : vector<8x25xbf16>, vector<25x128xbf16>, vector<8x128xf32> -> vector<8x128xf32>
    %134 = arith.negf %133 : vector<8x128xf32>
    %135 = math.exp %134 : vector<8x128xf32>
    %cst_30 = arith.constant 1.000000e+00 : f32
    %136 = vector.broadcast %cst_30 : f32 to vector<8x128xf32>
    %137 = arith.addf %136, %135 : vector<8x128xf32>
    %138 = arith.divf %136, %137 : vector<8x128xf32>
    %139 = arith.mulf %133, %138 : vector<8x128xf32>
    %c1_i32_31 = arith.constant 1 : i32
    %140 = tpu.dynamic_rotate %139 by %c1_i32_31 dim 1 : vector<8x128xf32>, i32 -> vector<8x128xf32>
    %141 = vector.broadcast %100 : vector<1x128xf32> to vector<8x128xf32>
    %142 = arith.mulf %141, %140 : vector<8x128xf32>
    %c127_i32_32 = arith.constant 127 : i32
    %143 = tpu.dynamic_rotate %139 by %c127_i32_32 dim 1 : vector<8x128xf32>, i32 -> vector<8x128xf32>
    %144 = vector.broadcast %104 : vector<1x128xf32> to vector<8x128xf32>
    %145 = arith.mulf %144, %143 : vector<8x128xf32>
    %146 = tpu.concatenate %142, %139, %145, %105 in 0 : vector<8x128xf32>, vector<8x128xf32>, vector<8x128xf32>, vector<1x128xf32> -> vector<25x128xf32>
    %147 = vector.extract_strided_slice %95 {offsets = [16, 0], sizes = [4, 25], strides = [1, 1]} : vector<128x128xbf16> to vector<4x25xbf16>
    %148 = arith.truncf %146 : vector<25x128xf32> to vector<25x128xbf16>
    %cst_33 = arith.constant dense<0.000000e+00> : vector<4x128xf32>
    %149 = tpu.matmul %147, %148, %cst_33 {dimension_numbers = #tpu.dot_dimension_numbers<[1], [0], [0], [1], [0, 0, 1, 1], [], []>} : vector<4x25xbf16>, vector<25x128xbf16>, vector<4x128xf32> -> vector<4x128xf32>
    %150 = arith.negf %149 : vector<4x128xf32>
    %151 = math.exp %150 : vector<4x128xf32>
    %cst_34 = arith.constant 1.000000e+00 : f32
    %152 = vector.broadcast %cst_34 : f32 to vector<4x128xf32>
    %153 = arith.addf %152, %151 : vector<4x128xf32>
    %154 = arith.divf %152, %153 : vector<4x128xf32>
    %155 = arith.mulf %149, %154 : vector<4x128xf32>
    %c1_i32_35 = arith.constant 1 : i32
    %156 = tpu.dynamic_rotate %155 by %c1_i32_35 dim 1 : vector<4x128xf32>, i32 -> vector<4x128xf32>
    %157 = vector.broadcast %100 : vector<1x128xf32> to vector<4x128xf32>
    %158 = arith.mulf %157, %156 : vector<4x128xf32>
    %c127_i32_36 = arith.constant 127 : i32
    %159 = tpu.dynamic_rotate %155 by %c127_i32_36 dim 1 : vector<4x128xf32>, i32 -> vector<4x128xf32>
    %160 = vector.broadcast %104 : vector<1x128xf32> to vector<4x128xf32>
    %161 = arith.mulf %160, %159 : vector<4x128xf32>
    %162 = tpu.concatenate %158, %155, %161, %105 in 0 : vector<4x128xf32>, vector<4x128xf32>, vector<4x128xf32>, vector<1x128xf32> -> vector<13x128xf32>
    %163 = vector.extract_strided_slice %95 {offsets = [24, 0], sizes = [3, 13], strides = [1, 1]} : vector<128x128xbf16> to vector<3x13xbf16>
    %164 = arith.truncf %162 : vector<13x128xf32> to vector<13x128xbf16>
    %cst_37 = arith.constant dense<0.000000e+00> : vector<3x128xf32>
    %165 = tpu.matmul %163, %164, %cst_37 {dimension_numbers = #tpu.dot_dimension_numbers<[1], [0], [0], [1], [0, 0, 1, 1], [], []>} : vector<3x13xbf16>, vector<13x128xbf16>, vector<3x128xf32> -> vector<3x128xf32>
    %166 = arith.negf %165 : vector<3x128xf32>
    %167 = math.exp %166 : vector<3x128xf32>
    %cst_38 = arith.constant 1.000000e+00 : f32
    %168 = vector.broadcast %cst_38 : f32 to vector<3x128xf32>
    %169 = arith.addf %168, %167 : vector<3x128xf32>
    %170 = arith.divf %168, %169 : vector<3x128xf32>
    %171 = arith.mulf %165, %170 : vector<3x128xf32>
    %c1_i32_39 = arith.constant 1 : i32
    %172 = tpu.dynamic_rotate %171 by %c1_i32_39 dim 1 : vector<3x128xf32>, i32 -> vector<3x128xf32>
    %173 = vector.broadcast %100 : vector<1x128xf32> to vector<3x128xf32>
    %174 = arith.mulf %173, %172 : vector<3x128xf32>
    %c127_i32_40 = arith.constant 127 : i32
    %175 = tpu.dynamic_rotate %171 by %c127_i32_40 dim 1 : vector<3x128xf32>, i32 -> vector<3x128xf32>
    %176 = vector.broadcast %104 : vector<1x128xf32> to vector<3x128xf32>
    %177 = arith.mulf %176, %175 : vector<3x128xf32>
    %178 = tpu.concatenate %174, %171, %177, %105 in 0 : vector<3x128xf32>, vector<3x128xf32>, vector<3x128xf32>, vector<1x128xf32> -> vector<10x128xf32>
    %179 = vector.extract_strided_slice %95 {offsets = [32, 0], sizes = [1, 10], strides = [1, 1]} : vector<128x128xbf16> to vector<1x10xbf16>
    %180 = arith.truncf %178 : vector<10x128xf32> to vector<10x128xbf16>
    %cst_41 = arith.constant dense<0.000000e+00> : vector<1x128xf32>
    %181 = tpu.matmul %179, %180, %cst_41 {dimension_numbers = #tpu.dot_dimension_numbers<[1], [0], [0], [1], [0, 0, 1, 1], [], []>} : vector<1x10xbf16>, vector<10x128xbf16>, vector<1x128xf32> -> vector<1x128xf32>
    %c1_42 = arith.constant 1 : index
    %c0_43 = arith.constant 0 : index
    %c0_44 = arith.constant 0 : index
    %182 = vector.load %arg2[%c1_42, %c0_43, %c0_44] : memref<2x16x128xf32, #tpu.memory_space<vmem>>, vector<1x16x128xf32>
    %183 = vector.shape_cast %182 : vector<1x16x128xf32> to vector<16x128xf32>
    %c1_i32_45 = arith.constant 1 : i32
    %184 = tpu.dynamic_rotate %183 by %c1_i32_45 dim 1 : vector<16x128xf32>, i32 -> vector<16x128xf32>
    %185 = vector.broadcast %100 : vector<1x128xf32> to vector<16x128xf32>
    %186 = arith.mulf %185, %184 : vector<16x128xf32>
    %c127_i32_46 = arith.constant 127 : i32
    %187 = tpu.dynamic_rotate %183 by %c127_i32_46 dim 1 : vector<16x128xf32>, i32 -> vector<16x128xf32>
    %188 = vector.broadcast %104 : vector<1x128xf32> to vector<16x128xf32>
    %189 = arith.mulf %188, %187 : vector<16x128xf32>
    %190 = tpu.concatenate %186, %183, %189, %105 in 0 : vector<16x128xf32>, vector<16x128xf32>, vector<16x128xf32>, vector<1x128xf32> -> vector<49x128xf32>
    %191 = vector.extract_strided_slice %95 {offsets = [0, 0], sizes = [8, 49], strides = [1, 1]} : vector<128x128xbf16> to vector<8x49xbf16>
    %192 = arith.truncf %190 : vector<49x128xf32> to vector<49x128xbf16>
    %cst_47 = arith.constant dense<0.000000e+00> : vector<8x128xf32>
    %193 = tpu.matmul %191, %192, %cst_47 {dimension_numbers = #tpu.dot_dimension_numbers<[1], [0], [0], [1], [0, 0, 1, 1], [], []>} : vector<8x49xbf16>, vector<49x128xbf16>, vector<8x128xf32> -> vector<8x128xf32>
    %194 = arith.negf %193 : vector<8x128xf32>
    %195 = math.exp %194 : vector<8x128xf32>
    %cst_48 = arith.constant 1.000000e+00 : f32
    %196 = vector.broadcast %cst_48 : f32 to vector<8x128xf32>
    %197 = arith.addf %196, %195 : vector<8x128xf32>
    %198 = arith.divf %196, %197 : vector<8x128xf32>
    %199 = arith.mulf %193, %198 : vector<8x128xf32>
    %c1_i32_49 = arith.constant 1 : i32
    %200 = tpu.dynamic_rotate %199 by %c1_i32_49 dim 1 : vector<8x128xf32>, i32 -> vector<8x128xf32>
    %201 = vector.broadcast %100 : vector<1x128xf32> to vector<8x128xf32>
    %202 = arith.mulf %201, %200 : vector<8x128xf32>
    %c127_i32_50 = arith.constant 127 : i32
    %203 = tpu.dynamic_rotate %199 by %c127_i32_50 dim 1 : vector<8x128xf32>, i32 -> vector<8x128xf32>
    %204 = vector.broadcast %104 : vector<1x128xf32> to vector<8x128xf32>
    %205 = arith.mulf %204, %203 : vector<8x128xf32>
    %206 = tpu.concatenate %202, %199, %205, %105 in 0 : vector<8x128xf32>, vector<8x128xf32>, vector<8x128xf32>, vector<1x128xf32> -> vector<25x128xf32>
    %207 = vector.extract_strided_slice %95 {offsets = [8, 0], sizes = [8, 25], strides = [1, 1]} : vector<128x128xbf16> to vector<8x25xbf16>
    %208 = arith.truncf %206 : vector<25x128xf32> to vector<25x128xbf16>
    %cst_51 = arith.constant dense<0.000000e+00> : vector<8x128xf32>
    %209 = tpu.matmul %207, %208, %cst_51 {dimension_numbers = #tpu.dot_dimension_numbers<[1], [0], [0], [1], [0, 0, 1, 1], [], []>} : vector<8x25xbf16>, vector<25x128xbf16>, vector<8x128xf32> -> vector<8x128xf32>
    %210 = arith.negf %209 : vector<8x128xf32>
    %211 = math.exp %210 : vector<8x128xf32>
    %cst_52 = arith.constant 1.000000e+00 : f32
    %212 = vector.broadcast %cst_52 : f32 to vector<8x128xf32>
    %213 = arith.addf %212, %211 : vector<8x128xf32>
    %214 = arith.divf %212, %213 : vector<8x128xf32>
    %215 = arith.mulf %209, %214 : vector<8x128xf32>
    %c1_i32_53 = arith.constant 1 : i32
    %216 = tpu.dynamic_rotate %215 by %c1_i32_53 dim 1 : vector<8x128xf32>, i32 -> vector<8x128xf32>
    %217 = vector.broadcast %100 : vector<1x128xf32> to vector<8x128xf32>
    %218 = arith.mulf %217, %216 : vector<8x128xf32>
    %c127_i32_54 = arith.constant 127 : i32
    %219 = tpu.dynamic_rotate %215 by %c127_i32_54 dim 1 : vector<8x128xf32>, i32 -> vector<8x128xf32>
    %220 = vector.broadcast %104 : vector<1x128xf32> to vector<8x128xf32>
    %221 = arith.mulf %220, %219 : vector<8x128xf32>
    %222 = tpu.concatenate %218, %215, %221, %105 in 0 : vector<8x128xf32>, vector<8x128xf32>, vector<8x128xf32>, vector<1x128xf32> -> vector<25x128xf32>
    %223 = vector.extract_strided_slice %95 {offsets = [16, 0], sizes = [4, 25], strides = [1, 1]} : vector<128x128xbf16> to vector<4x25xbf16>
    %224 = arith.truncf %222 : vector<25x128xf32> to vector<25x128xbf16>
    %cst_55 = arith.constant dense<0.000000e+00> : vector<4x128xf32>
    %225 = tpu.matmul %223, %224, %cst_55 {dimension_numbers = #tpu.dot_dimension_numbers<[1], [0], [0], [1], [0, 0, 1, 1], [], []>} : vector<4x25xbf16>, vector<25x128xbf16>, vector<4x128xf32> -> vector<4x128xf32>
    %226 = arith.negf %225 : vector<4x128xf32>
    %227 = math.exp %226 : vector<4x128xf32>
    %cst_56 = arith.constant 1.000000e+00 : f32
    %228 = vector.broadcast %cst_56 : f32 to vector<4x128xf32>
    %229 = arith.addf %228, %227 : vector<4x128xf32>
    %230 = arith.divf %228, %229 : vector<4x128xf32>
    %231 = arith.mulf %225, %230 : vector<4x128xf32>
    %c1_i32_57 = arith.constant 1 : i32
    %232 = tpu.dynamic_rotate %231 by %c1_i32_57 dim 1 : vector<4x128xf32>, i32 -> vector<4x128xf32>
    %233 = vector.broadcast %100 : vector<1x128xf32> to vector<4x128xf32>
    %234 = arith.mulf %233, %232 : vector<4x128xf32>
    %c127_i32_58 = arith.constant 127 : i32
    %235 = tpu.dynamic_rotate %231 by %c127_i32_58 dim 1 : vector<4x128xf32>, i32 -> vector<4x128xf32>
    %236 = vector.broadcast %104 : vector<1x128xf32> to vector<4x128xf32>
    %237 = arith.mulf %236, %235 : vector<4x128xf32>
    %238 = tpu.concatenate %234, %231, %237, %105 in 0 : vector<4x128xf32>, vector<4x128xf32>, vector<4x128xf32>, vector<1x128xf32> -> vector<13x128xf32>
    %239 = vector.extract_strided_slice %95 {offsets = [24, 0], sizes = [3, 13], strides = [1, 1]} : vector<128x128xbf16> to vector<3x13xbf16>
    %240 = arith.truncf %238 : vector<13x128xf32> to vector<13x128xbf16>
    %cst_59 = arith.constant dense<0.000000e+00> : vector<3x128xf32>
    %241 = tpu.matmul %239, %240, %cst_59 {dimension_numbers = #tpu.dot_dimension_numbers<[1], [0], [0], [1], [0, 0, 1, 1], [], []>} : vector<3x13xbf16>, vector<13x128xbf16>, vector<3x128xf32> -> vector<3x128xf32>
    %242 = arith.negf %241 : vector<3x128xf32>
    %243 = math.exp %242 : vector<3x128xf32>
    %cst_60 = arith.constant 1.000000e+00 : f32
    %244 = vector.broadcast %cst_60 : f32 to vector<3x128xf32>
    %245 = arith.addf %244, %243 : vector<3x128xf32>
    %246 = arith.divf %244, %245 : vector<3x128xf32>
    %247 = arith.mulf %241, %246 : vector<3x128xf32>
    %c1_i32_61 = arith.constant 1 : i32
    %248 = tpu.dynamic_rotate %247 by %c1_i32_61 dim 1 : vector<3x128xf32>, i32 -> vector<3x128xf32>
    %249 = vector.broadcast %100 : vector<1x128xf32> to vector<3x128xf32>
    %250 = arith.mulf %249, %248 : vector<3x128xf32>
    %c127_i32_62 = arith.constant 127 : i32
    %251 = tpu.dynamic_rotate %247 by %c127_i32_62 dim 1 : vector<3x128xf32>, i32 -> vector<3x128xf32>
    %252 = vector.broadcast %104 : vector<1x128xf32> to vector<3x128xf32>
    %253 = arith.mulf %252, %251 : vector<3x128xf32>
    %254 = tpu.concatenate %250, %247, %253, %105 in 0 : vector<3x128xf32>, vector<3x128xf32>, vector<3x128xf32>, vector<1x128xf32> -> vector<10x128xf32>
    %255 = vector.extract_strided_slice %95 {offsets = [32, 0], sizes = [1, 10], strides = [1, 1]} : vector<128x128xbf16> to vector<1x10xbf16>
    %256 = arith.truncf %254 : vector<10x128xf32> to vector<10x128xbf16>
    %cst_63 = arith.constant dense<0.000000e+00> : vector<1x128xf32>
    %257 = tpu.matmul %255, %256, %cst_63 {dimension_numbers = #tpu.dot_dimension_numbers<[1], [0], [0], [1], [0, 0, 1, 1], [], []>} : vector<1x10xbf16>, vector<10x128xbf16>, vector<1x128xf32> -> vector<1x128xf32>
    %258 = tpu.concatenate %181, %257 in 0 : vector<1x128xf32>, vector<1x128xf32> -> vector<2x128xf32>
    %259 = vector.extract_strided_slice %0 {offsets = [2, 0], sizes = [1, 128], strides = [1, 1]} : vector<25x128xf32> to vector<1x128xf32>
    %260 = vector.extract_strided_slice %0 {offsets = [3, 0], sizes = [1, 128], strides = [1, 1]} : vector<25x128xf32> to vector<1x128xf32>
    %cst_64 = arith.constant dense<0.000000e+00> : vector<2xf32>
    %261 = vector.multi_reduction <add>, %258, %cst_64 [1] : vector<2x128xf32> to vector<2xf32>
    %262 = vector.shape_cast %261 : vector<2xf32> to vector<2x1xf32>
    %cst_65 = arith.constant 1.280000e+02 : f32
    %263 = vector.broadcast %cst_65 : f32 to vector<2x1xf32>
    %264 = arith.divf %262, %263 : vector<2x1xf32>
    %265 = arith.mulf %258, %258 : vector<2x128xf32>
    %cst_66 = arith.constant dense<0.000000e+00> : vector<2xf32>
    %266 = vector.multi_reduction <add>, %265, %cst_66 [1] : vector<2x128xf32> to vector<2xf32>
    %267 = vector.shape_cast %266 : vector<2xf32> to vector<2x1xf32>
    %cst_67 = arith.constant 1.280000e+02 : f32
    %268 = vector.broadcast %cst_67 : f32 to vector<2x1xf32>
    %269 = arith.divf %267, %268 : vector<2x1xf32>
    %270 = vector.broadcast %264 : vector<2x1xf32> to vector<2x128xf32>
    %271 = arith.subf %258, %270 : vector<2x128xf32>
    %272 = arith.mulf %264, %264 : vector<2x1xf32>
    %273 = arith.subf %269, %272 : vector<2x1xf32>
    %cst_68 = arith.constant 9.99999974E-6 : f32
    %274 = vector.broadcast %cst_68 : f32 to vector<2x1xf32>
    %275 = arith.addf %273, %274 : vector<2x1xf32>
    %276 = math.rsqrt %275 : vector<2x1xf32>
    %277 = vector.broadcast %276 : vector<2x1xf32> to vector<2x128xf32>
    %278 = arith.mulf %271, %277 : vector<2x128xf32>
    %279 = vector.broadcast %259 : vector<1x128xf32> to vector<2x128xf32>
    %280 = arith.mulf %278, %279 : vector<2x128xf32>
    %281 = vector.broadcast %260 : vector<1x128xf32> to vector<2x128xf32>
    %282 = arith.addf %280, %281 : vector<2x128xf32>
    %283 = arith.truncf %282 : vector<2x128xf32> to vector<2x128xbf16>
    %c1_69 = arith.constant 1 : index
    %c0_70 = arith.constant 0 : index
    %c0_71 = arith.constant 0 : index
    %284 = vector.load %arg3[%c1_69, %c0_70, %c0_71] : memref<10x128x128xbf16, #tpu.memory_space<vmem>>, vector<1x128x128xbf16>
    %285 = vector.shape_cast %284 : vector<1x128x128xbf16> to vector<128x128xbf16>
    %cst_72 = arith.constant dense<0.000000e+00> : vector<2x128xf32>
    %286 = tpu.matmul %283, %285, %cst_72 {dimension_numbers = #tpu.dot_dimension_numbers<[1], [0], [0], [1], [0, 0, 1, 1], [], []>} : vector<2x128xbf16>, vector<128x128xbf16>, vector<2x128xf32> -> vector<2x128xf32>
    %287 = vector.extract_strided_slice %0 {offsets = [11, 0], sizes = [1, 128], strides = [1, 1]} : vector<25x128xf32> to vector<1x128xf32>
    %288 = vector.broadcast %287 : vector<1x128xf32> to vector<2x128xf32>
    %289 = arith.addf %286, %288 : vector<2x128xf32>
    %290 = vector.extract_strided_slice %289 {offsets = [0, 0], sizes = [1, 128], strides = [1, 1]} : vector<2x128xf32> to vector<1x128xf32>
    %291 = vector.shape_cast %290 : vector<1x128xf32> to vector<1x128xf32>
    %292 = vector.broadcast %291 : vector<1x128xf32> to vector<8x128xf32>
    %293 = vector.extract_strided_slice %289 {offsets = [1, 0], sizes = [1, 128], strides = [1, 1]} : vector<2x128xf32> to vector<1x128xf32>
    %294 = vector.shape_cast %293 : vector<1x128xf32> to vector<1x128xf32>
    %295 = vector.broadcast %294 : vector<1x128xf32> to vector<8x128xf32>
    %296 = tpu.concatenate %292, %295 in 0 : vector<8x128xf32>, vector<8x128xf32> -> vector<16x128xf32>
    %297 = vector.extract_strided_slice %0 {offsets = [4, 0], sizes = [1, 128], strides = [1, 1]} : vector<25x128xf32> to vector<1x128xf32>
    %298 = vector.extract_strided_slice %0 {offsets = [5, 0], sizes = [1, 128], strides = [1, 1]} : vector<25x128xf32> to vector<1x128xf32>
    %cst_73 = arith.constant dense<0.000000e+00> : vector<16xf32>
    %299 = vector.multi_reduction <add>, %296, %cst_73 [1] : vector<16x128xf32> to vector<16xf32>
    %300 = vector.shape_cast %299 : vector<16xf32> to vector<16x1xf32>
    %cst_74 = arith.constant 1.280000e+02 : f32
    %301 = vector.broadcast %cst_74 : f32 to vector<16x1xf32>
    %302 = arith.divf %300, %301 : vector<16x1xf32>
    %303 = arith.mulf %296, %296 : vector<16x128xf32>
    %cst_75 = arith.constant dense<0.000000e+00> : vector<16xf32>
    %304 = vector.multi_reduction <add>, %303, %cst_75 [1] : vector<16x128xf32> to vector<16xf32>
    %305 = vector.shape_cast %304 : vector<16xf32> to vector<16x1xf32>
    %cst_76 = arith.constant 1.280000e+02 : f32
    %306 = vector.broadcast %cst_76 : f32 to vector<16x1xf32>
    %307 = arith.divf %305, %306 : vector<16x1xf32>
    %308 = vector.broadcast %302 : vector<16x1xf32> to vector<16x128xf32>
    %309 = arith.subf %296, %308 : vector<16x128xf32>
    %310 = arith.mulf %302, %302 : vector<16x1xf32>
    %311 = arith.subf %307, %310 : vector<16x1xf32>
    %cst_77 = arith.constant 9.99999974E-6 : f32
    %312 = vector.broadcast %cst_77 : f32 to vector<16x1xf32>
    %313 = arith.addf %311, %312 : vector<16x1xf32>
    %314 = math.rsqrt %313 : vector<16x1xf32>
    %315 = vector.broadcast %314 : vector<16x1xf32> to vector<16x128xf32>
    %316 = arith.mulf %309, %315 : vector<16x128xf32>
    %317 = vector.broadcast %297 : vector<1x128xf32> to vector<16x128xf32>
    %318 = arith.mulf %316, %317 : vector<16x128xf32>
    %319 = vector.broadcast %298 : vector<1x128xf32> to vector<16x128xf32>
    %320 = arith.addf %318, %319 : vector<16x128xf32>
    %cst_78 = arith.constant 1.000000e+00 : f32
    %321 = vector.broadcast %cst_78 : f32 to vector<16x128xf32>
    %322 = arith.addf %321, %52 : vector<16x128xf32>
    %323 = arith.mulf %320, %322 : vector<16x128xf32>
    %324 = arith.addf %323, %63 : vector<16x128xf32>
    %325 = arith.negf %324 : vector<16x128xf32>
    %326 = math.exp %325 : vector<16x128xf32>
    %cst_79 = arith.constant 1.000000e+00 : f32
    %327 = vector.broadcast %cst_79 : f32 to vector<16x128xf32>
    %328 = arith.addf %327, %326 : vector<16x128xf32>
    %329 = arith.divf %327, %328 : vector<16x128xf32>
    %330 = arith.mulf %324, %329 : vector<16x128xf32>
    %331 = arith.truncf %330 : vector<16x128xf32> to vector<16x128xbf16>
    %c2 = arith.constant 2 : index
    %c0_80 = arith.constant 0 : index
    %c0_81 = arith.constant 0 : index
    %332 = vector.load %arg3[%c2, %c0_80, %c0_81] : memref<10x128x128xbf16, #tpu.memory_space<vmem>>, vector<1x128x128xbf16>
    %333 = vector.shape_cast %332 : vector<1x128x128xbf16> to vector<128x128xbf16>
    %cst_82 = arith.constant dense<0.000000e+00> : vector<16x128xf32>
    %334 = tpu.matmul %331, %333, %cst_82 {dimension_numbers = #tpu.dot_dimension_numbers<[1], [0], [0], [1], [0, 0, 1, 1], [], []>} : vector<16x128xbf16>, vector<128x128xbf16>, vector<16x128xf32> -> vector<16x128xf32>
    %335 = vector.extract_strided_slice %0 {offsets = [12, 0], sizes = [1, 128], strides = [1, 1]} : vector<25x128xf32> to vector<1x128xf32>
    %336 = vector.broadcast %335 : vector<1x128xf32> to vector<16x128xf32>
    %337 = arith.addf %334, %336 : vector<16x128xf32>
    %338 = arith.addf %93, %337 : vector<16x128xf32>
    %339 = arith.truncf %338 : vector<16x128xf32> to vector<16x128xbf16>
    %c3 = arith.constant 3 : index
    %c0_83 = arith.constant 0 : index
    %c0_84 = arith.constant 0 : index
    %340 = vector.load %arg3[%c3, %c0_83, %c0_84] : memref<10x128x128xbf16, #tpu.memory_space<vmem>>, vector<1x128x128xbf16>
    %341 = vector.shape_cast %340 : vector<1x128x128xbf16> to vector<128x128xbf16>
    %cst_85 = arith.constant dense<0.000000e+00> : vector<16x128xf32>
    %342 = tpu.matmul %339, %341, %cst_85 {dimension_numbers = #tpu.dot_dimension_numbers<[1], [0], [0], [1], [0, 0, 1, 1], [], []>} : vector<16x128xbf16>, vector<128x128xbf16>, vector<16x128xf32> -> vector<16x128xf32>
    %343 = vector.extract_strided_slice %0 {offsets = [13, 0], sizes = [1, 128], strides = [1, 1]} : vector<25x128xf32> to vector<1x128xf32>
    %344 = vector.broadcast %343 : vector<1x128xf32> to vector<16x128xf32>
    %345 = arith.addf %342, %344 : vector<16x128xf32>
    %346 = arith.mulf %345, %345 : vector<16x128xf32>
    %347 = arith.mulf %345, %346 : vector<16x128xf32>
    %cst_86 = arith.constant 4.471500e-02 : f32
    %348 = vector.broadcast %cst_86 : f32 to vector<16x128xf32>
    %349 = arith.mulf %348, %347 : vector<16x128xf32>
    %350 = arith.addf %345, %349 : vector<16x128xf32>
    %cst_87 = arith.constant 0.797884583 : f32
    %351 = vector.broadcast %cst_87 : f32 to vector<16x128xf32>
    %352 = arith.mulf %351, %350 : vector<16x128xf32>
    %353 = math.tanh %352 : vector<16x128xf32>
    %cst_88 = arith.constant 1.000000e+00 : f32
    %354 = vector.broadcast %cst_88 : f32 to vector<16x128xf32>
    %355 = arith.addf %354, %353 : vector<16x128xf32>
    %cst_89 = arith.constant 5.000000e-01 : f32
    %356 = vector.broadcast %cst_89 : f32 to vector<16x128xf32>
    %357 = arith.mulf %356, %355 : vector<16x128xf32>
    %358 = arith.mulf %345, %357 : vector<16x128xf32>
    %359 = arith.truncf %358 : vector<16x128xf32> to vector<16x128xbf16>
    %c4 = arith.constant 4 : index
    %c0_90 = arith.constant 0 : index
    %c0_91 = arith.constant 0 : index
    %360 = vector.load %arg3[%c4, %c0_90, %c0_91] : memref<10x128x128xbf16, #tpu.memory_space<vmem>>, vector<1x128x128xbf16>
    %361 = vector.shape_cast %360 : vector<1x128x128xbf16> to vector<128x128xbf16>
    %cst_92 = arith.constant dense<0.000000e+00> : vector<16x128xf32>
    %362 = tpu.matmul %359, %361, %cst_92 {dimension_numbers = #tpu.dot_dimension_numbers<[1], [0], [0], [1], [0, 0, 1, 1], [], []>} : vector<16x128xbf16>, vector<128x128xbf16>, vector<16x128xf32> -> vector<16x128xf32>
    %363 = vector.extract_strided_slice %0 {offsets = [14, 0], sizes = [1, 128], strides = [1, 1]} : vector<25x128xf32> to vector<1x128xf32>
    %364 = vector.broadcast %363 : vector<1x128xf32> to vector<16x128xf32>
    %365 = arith.addf %362, %364 : vector<16x128xf32>
    %366 = vector.extract_strided_slice %0 {offsets = [6, 0], sizes = [1, 128], strides = [1, 1]} : vector<25x128xf32> to vector<1x128xf32>
    %367 = vector.extract_strided_slice %0 {offsets = [7, 0], sizes = [1, 128], strides = [1, 1]} : vector<25x128xf32> to vector<1x128xf32>
    %cst_93 = arith.constant dense<0.000000e+00> : vector<16xf32>
    %368 = vector.multi_reduction <add>, %365, %cst_93 [1] : vector<16x128xf32> to vector<16xf32>
    %369 = vector.shape_cast %368 : vector<16xf32> to vector<16x1xf32>
    %cst_94 = arith.constant 1.280000e+02 : f32
    %370 = vector.broadcast %cst_94 : f32 to vector<16x1xf32>
    %371 = arith.divf %369, %370 : vector<16x1xf32>
    %372 = arith.mulf %365, %365 : vector<16x128xf32>
    %cst_95 = arith.constant dense<0.000000e+00> : vector<16xf32>
    %373 = vector.multi_reduction <add>, %372, %cst_95 [1] : vector<16x128xf32> to vector<16xf32>
    %374 = vector.shape_cast %373 : vector<16xf32> to vector<16x1xf32>
    %cst_96 = arith.constant 1.280000e+02 : f32
    %375 = vector.broadcast %cst_96 : f32 to vector<16x1xf32>
    %376 = arith.divf %374, %375 : vector<16x1xf32>
    %377 = vector.broadcast %371 : vector<16x1xf32> to vector<16x128xf32>
    %378 = arith.subf %365, %377 : vector<16x128xf32>
    %379 = arith.mulf %371, %371 : vector<16x1xf32>
    %380 = arith.subf %376, %379 : vector<16x1xf32>
    %cst_97 = arith.constant 9.99999974E-6 : f32
    %381 = vector.broadcast %cst_97 : f32 to vector<16x1xf32>
    %382 = arith.addf %380, %381 : vector<16x1xf32>
    %383 = math.rsqrt %382 : vector<16x1xf32>
    %384 = vector.broadcast %383 : vector<16x1xf32> to vector<16x128xf32>
    %385 = arith.mulf %378, %384 : vector<16x128xf32>
    %386 = vector.broadcast %366 : vector<1x128xf32> to vector<16x128xf32>
    %387 = arith.mulf %385, %386 : vector<16x128xf32>
    %388 = vector.broadcast %367 : vector<1x128xf32> to vector<16x128xf32>
    %389 = arith.addf %387, %388 : vector<16x128xf32>
    %cst_98 = arith.constant 1.000000e+00 : f32
    %390 = vector.broadcast %cst_98 : f32 to vector<16x128xf32>
    %391 = arith.addf %390, %74 : vector<16x128xf32>
    %392 = arith.mulf %389, %391 : vector<16x128xf32>
    %393 = arith.addf %392, %85 : vector<16x128xf32>
    %394 = arith.negf %393 : vector<16x128xf32>
    %395 = math.exp %394 : vector<16x128xf32>
    %cst_99 = arith.constant 1.000000e+00 : f32
    %396 = vector.broadcast %cst_99 : f32 to vector<16x128xf32>
    %397 = arith.addf %396, %395 : vector<16x128xf32>
    %398 = arith.divf %396, %397 : vector<16x128xf32>
    %399 = arith.mulf %393, %398 : vector<16x128xf32>
    %400 = arith.truncf %399 : vector<16x128xf32> to vector<16x128xbf16>
    %c5 = arith.constant 5 : index
    %c0_100 = arith.constant 0 : index
    %c0_101 = arith.constant 0 : index
    %401 = vector.load %arg3[%c5, %c0_100, %c0_101] : memref<10x128x128xbf16, #tpu.memory_space<vmem>>, vector<1x128x128xbf16>
    %402 = vector.shape_cast %401 : vector<1x128x128xbf16> to vector<128x128xbf16>
    %cst_102 = arith.constant dense<0.000000e+00> : vector<16x128xf32>
    %403 = tpu.matmul %400, %402, %cst_102 {dimension_numbers = #tpu.dot_dimension_numbers<[1], [0], [0], [1], [0, 0, 1, 1], [], []>} : vector<16x128xbf16>, vector<128x128xbf16>, vector<16x128xf32> -> vector<16x128xf32>
    %404 = arith.addf %338, %403 : vector<16x128xf32>
    %405 = vector.extract_strided_slice %0 {offsets = [15, 0], sizes = [1, 128], strides = [1, 1]} : vector<25x128xf32> to vector<1x128xf32>
    %406 = vector.broadcast %405 : vector<1x128xf32> to vector<16x128xf32>
    %407 = arith.addf %404, %406 : vector<16x128xf32>
    %408 = vector.extract_strided_slice %0 {offsets = [8, 0], sizes = [1, 128], strides = [1, 1]} : vector<25x128xf32> to vector<1x128xf32>
    %409 = vector.extract_strided_slice %0 {offsets = [9, 0], sizes = [1, 128], strides = [1, 1]} : vector<25x128xf32> to vector<1x128xf32>
    %cst_103 = arith.constant dense<0.000000e+00> : vector<16xf32>
    %410 = vector.multi_reduction <add>, %407, %cst_103 [1] : vector<16x128xf32> to vector<16xf32>
    %411 = vector.shape_cast %410 : vector<16xf32> to vector<16x1xf32>
    %cst_104 = arith.constant 1.280000e+02 : f32
    %412 = vector.broadcast %cst_104 : f32 to vector<16x1xf32>
    %413 = arith.divf %411, %412 : vector<16x1xf32>
    %414 = arith.mulf %407, %407 : vector<16x128xf32>
    %cst_105 = arith.constant dense<0.000000e+00> : vector<16xf32>
    %415 = vector.multi_reduction <add>, %414, %cst_105 [1] : vector<16x128xf32> to vector<16xf32>
    %416 = vector.shape_cast %415 : vector<16xf32> to vector<16x1xf32>
    %cst_106 = arith.constant 1.280000e+02 : f32
    %417 = vector.broadcast %cst_106 : f32 to vector<16x1xf32>
    %418 = arith.divf %416, %417 : vector<16x1xf32>
    %419 = vector.broadcast %413 : vector<16x1xf32> to vector<16x128xf32>
    %420 = arith.subf %407, %419 : vector<16x128xf32>
    %421 = arith.mulf %413, %413 : vector<16x1xf32>
    %422 = arith.subf %418, %421 : vector<16x1xf32>
    %cst_107 = arith.constant 9.99999974E-6 : f32
    %423 = vector.broadcast %cst_107 : f32 to vector<16x1xf32>
    %424 = arith.addf %422, %423 : vector<16x1xf32>
    %425 = math.rsqrt %424 : vector<16x1xf32>
    %426 = vector.broadcast %425 : vector<16x1xf32> to vector<16x128xf32>
    %427 = arith.mulf %420, %426 : vector<16x128xf32>
    %428 = vector.broadcast %408 : vector<1x128xf32> to vector<16x128xf32>
    %429 = arith.mulf %427, %428 : vector<16x128xf32>
    %430 = vector.broadcast %409 : vector<1x128xf32> to vector<16x128xf32>
    %431 = arith.addf %429, %430 : vector<16x128xf32>
    %432 = arith.truncf %431 : vector<16x128xf32> to vector<16x128xbf16>
    %c6 = arith.constant 6 : index
    %c0_108 = arith.constant 0 : index
    %c0_109 = arith.constant 0 : index
    %433 = vector.load %arg3[%c6, %c0_108, %c0_109] : memref<10x128x128xbf16, #tpu.memory_space<vmem>>, vector<1x128x128xbf16>
    %434 = vector.shape_cast %433 : vector<1x128x128xbf16> to vector<128x128xbf16>
    %cst_110 = arith.constant dense<0.000000e+00> : vector<16x128xf32>
    %435 = tpu.matmul %432, %434, %cst_110 {dimension_numbers = #tpu.dot_dimension_numbers<[1], [0], [0], [1], [0, 0, 1, 1], [], []>} : vector<16x128xbf16>, vector<128x128xbf16>, vector<16x128xf32> -> vector<16x128xf32>
    %436 = vector.extract_strided_slice %0 {offsets = [16, 0], sizes = [1, 128], strides = [1, 1]} : vector<25x128xf32> to vector<1x128xf32>
    %437 = vector.broadcast %436 : vector<1x128xf32> to vector<16x128xf32>
    %438 = arith.addf %435, %437 : vector<16x128xf32>
    %439 = arith.negf %438 : vector<16x128xf32>
    %440 = math.exp %439 : vector<16x128xf32>
    %cst_111 = arith.constant 1.000000e+00 : f32
    %441 = vector.broadcast %cst_111 : f32 to vector<16x128xf32>
    %442 = arith.addf %441, %440 : vector<16x128xf32>
    %443 = arith.divf %441, %442 : vector<16x128xf32>
    %c0_112 = arith.constant 0 : index
    %c0_113 = arith.constant 0 : index
    %444 = vector.load %arg6[%c0_112, %c0_113] : memref<16x128xf32, #tpu.memory_space<vmem>>, vector<16x128xf32>
    tpu.vector_store %arg6[%c0_112, %c0_113], %443 {strides = array<i32>} : memref<16x128xf32, #tpu.memory_space<vmem>>, vector<16x128xf32>,
    return
  }
}

</mosaic_0001>

<bundles_post_ra>
// kernel: one_d_unet_forward.1
= control target key start
LH: loop header
LB: loop body
LE: loop exit
PB: predicated region body
PF: predicated region fallthrough
CT: control target
= control target key end

     0   :  { %11 = vsyncpa [#allocation5], 0  ;;  %s3877_s0 = inlined_call_operand.vmem [shape: f32[2], index: 0, kind: input, shape index: {}]   ;;  %s3878_s1 = inlined_call_operand.hbm [shape: f32[16,128], index: 1, kind: input, shape index: {}]   ;;  %s3879_s2 = inlined_call_operand.hbm [shape: f32[2,16,128], index: 2, kind: input, shape index: {}]   ;;  %s3880_s3 = inlined_call_operand.hbm [shape: bf16[10,128,128], index: 3, kind: input, shape index: {}]   ;;  %s3881_s4 = inlined_call_operand.hbm [shape: bf16[128,512], index: 4, kind: input, shape index: {}]   ;;  %s3882_s5 = inlined_call_operand.hbm [shape: f32[25,128], index: 5, kind: input, shape index: {}]   ;;  %s3883_s6 = inlined_call_operand.hbm [shape: f32[16,128], index: 6, kind: output, shape index: {}]  }
   0x1   :  { %12 = vsyncpa [#allocation3], 0 }
   0x2   :  { %13 = vsyncpa [#allocation8], 0 }
   0x3   :  { %14 = vsyncpa [#allocation11], 0 }
   0x4   :  { %15 = vsyncpa [#allocation4], 0  ;;  %s3360_s21 = smov [#allocation7]   ;;  %s3361_s23 = smov [#allocation10]  }
   0x5   :  { %s43_s22 = sshll.u32 %s3360_s21, 4  ;;  %s67_s24 = sshll.u32 %s3361_s23, 4  ;;  %s44_s22 = int_to_ptr.vmem [resolvable:$true] %s43_s22  ;;  %s68_s24 = int_to_ptr.vmem [resolvable:$true] %s67_s24 }
   0x6   :  { %s3226_s25 = scalar_lea.vmem %s44_s22, 512  ;;  %p3231_p1 = scmp.lt.s32.totalorder %s44_s22, %s44_s22 }
   0x7   :  { %p3227_p0 = scmp.ne.s32.totalorder %s44_s22, %s3226_s25  ;;  %p3232_p2 = scmp.lt.s32.totalorder %s3226_s25, %s3226_s25 }
   0x9   :  { %p3233_p3 = por %p3232_p2, %p3231_p1 }
   0xb   :  { %p3234_p4 = pnand %p3233_p3, %p3227_p0 }
   0xd   :  { %3237 = shalt.err (!%p3234_p4)
}
   0xe   :  { %s3362_s26 = smov 128   ;;  %s3363_s27 = smov 8  }
   0xf   :  { %49 = dma.hbm_to_vmem [thread:$0]  %s3879_s2, 512, %s44_s22, [#allocation8], %s3362_s26, %s3362_s26, %s3363_s27  }
  0x10   :  { %s3246_s30 = scalar_lea.vmem %s68_s24, 4096  ;;  %p3251_p6 = scmp.lt.s32.totalorder %s68_s24, %s68_s24 }
  0x11   :  { %p3247_p5 = scmp.ne.s32.totalorder %s68_s24, %s3246_s30  ;;  %p3252_p7 = scmp.lt.s32.totalorder %s3246_s30, %s3246_s30 }
  0x13   :  { %p3253_p8 = por %p3252_p7, %p3251_p6 }
  0x15   :  { %p3254_p9 = pnand %p3253_p8, %p3247_p5 }
  0x17   :  { %3257 = shalt.err (!%p3254_p9)
}
  0x18   :  { %s3364_s7 = smov 256   ;;  %s3365_s8 = smov 16  }
  0x19   :  { %73 = dma.hbm_to_vmem [thread:$0]  %s3881_s4, 4096, %s68_s24, [#allocation11], %s3364_s7, %s3364_s7, %s3365_s8  }
  0x1a   :  { %s22_s13 = sshll.u32 %s3877_s0, 4  ;;  %s23_s13 = int_to_ptr.vmem [resolvable:$true] %s22_s13 }
  0x1b   :  { %s3258_s14 = scalar_lea.vmem %s23_s13, 16  ;;  %p3263_p11 = scmp.lt.s32.totalorder %s23_s13, %s23_s13 }
  0x1c   :  { %p3259_p10 = scmp.ne.s32.totalorder %s23_s13, %s3258_s14  ;;  %p3264_p12 = scmp.lt.s32.totalorder %s3258_s14, %s3258_s14 }
  0x1e   :  { %p3265_p13 = por %p3264_p12, %p3263_p11 }
  0x20   :  { %p3266_p0 = pnand %p3265_p13, %p3259_p10 }
  0x22   :  { %3269 = shalt.err (!%p3266_p0)
}
  0x23   :  { %s3366_s2 = smov [#allocation2]   ;;  %s3367_s15 = smov [#allocation6]  }
  0x24   :  { %25 = dma.vmem_to_smem %s23_s13, 16, %s3366_s2, [#allocation5]  }
  0x25   :  { %s31_s16 = sshll.u32 %s3367_s15, 4  ;;  %s3368_s17 = smov [#allocation9]   ;;  %s32_s16 = int_to_ptr.vmem [resolvable:$true] %s31_s16 }
  0x26   :  { %s55_s18 = sshll.u32 %s3368_s17, 4  ;;  %s3278_s4 = scalar_lea.vmem %s32_s16, 256  ;;  %s56_s18 = int_to_ptr.vmem [resolvable:$true] %s55_s18 }
  0x27   :  { %p3279_p1 = scmp.ne.s32.totalorder %s32_s16, %s3278_s4  ;;  %p3283_p2 = scmp.lt.s32.totalorder %s32_s16, %s32_s16 }
  0x28   :  { %p3284_p3 = scmp.lt.s32.totalorder %s3278_s4, %s3278_s4 }
  0x2a   :  { %p3285_p4 = por %p3284_p3, %p3283_p2 }
  0x2c   :  { %p3286_p5 = pnand %p3285_p4, %p3279_p1 }
  0x2e   :  { %3289 = shalt.err (!%p3286_p5)
}
  0x2f   :  { %37 = dma.hbm_to_vmem [thread:$0]  %s3878_s1, 256, %s32_s16, [#allocation3], %s3362_s26, %s3362_s26, %s3363_s27  }
  0x30   :  { %s3298_s20 = scalar_lea.vmem %s56_s18, 10240  ;;  %p3303_p7 = scmp.lt.s32.totalorder %s56_s18, %s56_s18 }
  0x31   :  { %p3299_p6 = scmp.ne.s32.totalorder %s56_s18, %s3298_s20  ;;  %p3304_p8 = scmp.lt.s32.totalorder %s3298_s20, %s3298_s20 }
  0x33   :  { %p3305_p9 = por %p3304_p8, %p3303_p7 }
  0x35   :  { %p3306_p10 = pnand %p3305_p9, %p3299_p6 }
  0x37   :  { %3309 = shalt.err (!%p3306_p10)
}
  0x38   :  { %s3369_s21 = smov 64   ;;  %s3370_s22 = smov 4  }
  0x39   :  { %61 = dma.hbm_to_vmem [thread:$0]  %s3880_s3, 10240, %s56_s18, [#allocation8], %s3369_s21, %s3369_s21, %s3370_s22  }
  0x3a   :  { %s3371_s25 = smov [#allocation12]  }
  0x3b   :  { %s79_s28 = sshll.u32 %s3371_s25, 4  ;;  %s80_s28 = int_to_ptr.vmem [resolvable:$true] %s79_s28 }
  0x3c   :  { %s3318_s29 = scalar_lea.vmem %s80_s28, 512  ;;  %p3323_p12 = scmp.lt.s32.totalorder %s80_s28, %s80_s28 }
  0x3d   :  { %p3319_p11 = scmp.ne.s32.totalorder %s80_s28, %s3318_s29  ;;  %p3324_p13 = scmp.lt.s32.totalorder %s3318_s29, %s3318_s29 }
  0x3f   :  { %p3325_p0 = por %p3324_p13, %p3323_p12 }
  0x41   :  { %p3326_p1 = pnand %p3325_p0, %p3319_p11 }
  0x43   :  { %3329 = shalt.err (!%p3326_p1)
}
  0x44   :  { %85 = dma.hbm_to_vmem [thread:$0]  %s3882_s5, 512, %s80_s28, [#allocation11], %s3362_s26, %s3362_s26, %s3363_s27  }
  0x45   :  { %3350 = dma.done.wait [#allocation5], 16  }
  0x46   :  { %3351 = vsyncadd [#allocation5], 4294967280 }
  0x47   :  { %3352 = dma.done.wait [#allocation3], 256  }
  0x48   :  { %3353 = vsyncadd [#allocation3], 4294967040 }
  0x49   :  { %3354 = dma.done.wait [#allocation8], 10752  }
  0x4a   :  { %3355 = vsyncadd [#allocation8], 4294956544 }
  0x4b   :  { %3356 = dma.done.wait [#allocation11], 4608  }
  0x4c   :  { %3357 = vsyncadd [#allocation11], 4294962688 }
  0x4d   :  { %104 = sfence }
  0x4e   :  { %v3011_v0 = vld [vmem:[#allocation9 + $0x1f8] sm:$0xff]   ;;  %v3372_v1 = vmov 0.0   ;;  %v3012_v2 = vld [vmem:[#allocation9 + $0x1f0] sm:$0xff]   ;;  %vm3373_vm0 = vmmov 0   ;;  %v124_v3 = vlaneseq  ;;  %v3013_v4 = vld [vmem:[#allocation9 + $0x1e8] sm:$0xff]   ;;  %s110_s3 = sld [smem:[#allocation2]] }
  0x4f   :  { %2721 = vmatprep.subr.bf16.mxu0 %v3372_v1  ;;  %2741 = vmatprep.subr.bf16.mxu1 %v3372_v1  ;;  %s2472_s5 = sld [smem:[#allocation2 + $0x1]]  ;;  %v3014_v6 = vld [vmem:[#allocation9 + $0x1e0] sm:$0xff]   ;;  %v3459_v7 = vld [vmem:[#allocation12 + $0x10] sm:$0xff]  ;;  %v3015_v9 = vld [vmem:[#allocation9 + $0x1d8] sm:$0xff]   ;;  %vm122_vm1 = vcmask 1040384   ;;  %s3380_s7 = smov 127  }
  0x50   :  { %2722 = vmatpush3.bf16.msra.mxu0 %v3011_v0  ;;  %2737 = vmatprep.mubr.msk.bf16.mxu0 %vm3373_vm0, %v3372_v1  ;;  %v3456_v5 = vshrl.u32 %v124_v3, 7  ;;  %v3016_v13 = vld [vmem:[#allocation9 + $0x1d0] sm:$0xff]   ;;  %v3017_v18 = vld [vmem:[#allocation9 + $0x1c8] sm:$0xff]   ;;  %v3018_v23 = vld [vmem:[#allocation9 + $0x1c0] sm:$0xff]   ;;  %v3374_v34 = vmov 683565275  }
  0x51   :  { %2723 = vmatprep.subr.bf16.mxu0 %v3372_v1  ;;  %2757 = vmatprep.mubr.msk.bf16.mxu1 %vm3373_vm0, %v3372_v1  ;;  %v3375_v36 = vmov 2475754826   ;;  %v3376_v38 = vmov 2131351028   ;;  %v3377_v40 = vmov 2102212464  }
  0x52   :  { %v3462_v8 = vsub.s32 4, %v3456_v5  ;;  %v3378_v42 = vmov 920167782   ;;  %v3379_v49 = vmov 1326507024   ;;  %s3381_s8 = smov 1  }
  0x53   :  { %s3385_s9 = smov [#allocation13]  }
  0x54   :  { %2724 = vmatpush3.bf16.msra.mxu0 %v3012_v2  ;;  %v111_v10 = vstv %s110_s3  ;;  %v127_v16 = vrot.slane %v3459_v7, %v3462_v8  ;;  %s2457_s10 = sshll.u32 %s3385_s9, 4  ;;  %s2458_s10 = int_to_ptr.vmem [resolvable:$true] %s2457_s10 }
  0x55   :  { %2725 = vmatprep.subr.bf16.mxu0 %v3372_v1  ;;  %v112_v11 = vmul.f32 %v111_v10, %v3459_v7  ;;  %v114_v12 = vstv %s2472_s5  ;;  %s3330_s11 = scalar_lea.vmem %s2458_s10, 256  ;;  %p3335_p3 = scmp.lt.s32.totalorder %s2458_s10, %s2458_s10 }
  0x56   :  { %v115_v14 = vmul.f32 %v114_v12, %v3459_v7  ;;  %p3331_p2 = scmp.ne.s32.totalorder %s2458_s10, %s3330_s11  ;;  %p3336_p4 = scmp.lt.s32.totalorder %s3330_s11, %s3330_s11 }
  0x57   :  { %v117_v15 = vrot.slane %v112_v11, 3 }
  0x58   :  { %2726 = vmatpush3.bf16.msra.mxu0 %v3013_v4  ;;  %v120_v17 = vrot.slane %v115_v14, 2  ;;  %p3337_p5 = por %p3336_p4, %p3335_p3 }
  0x59   :  { %2727 = vmatprep.subr.bf16.mxu0 %v3372_v1 }
  0x5a   :  { %v123_v19 = vsel %vm122_vm1, %v117_v15, %v120_v17  ;;  %p3338_p6 = pnand %p3337_p5, %p3331_p2 }
  0x5b   :  { %v3472_v20 = vadd.f32 %v127_v16, %v123_v19 }
  0x5c   :  { %2728 = vmatpush3.bf16.msra.mxu0 %v3014_v6 }
  0x5d   :  { %2729 = vmatprep.subr.bf16.mxu0 %v3372_v1  ;;  %v129_v21 = vand.u32 2147483647, %v3472_v20  ;;  %v132_v22 = vand.u32 2139095040, %v3472_v20  ;;  %vm131_vm9 = vcmp.lt.s32.totalorder %v3472_v20, 0  ;;  %vm221_vm14 = vweird.f32 %v3472_v20 }
  0x5f   :  { %v133_v24 = vshrl.u32 %v132_v22, 23  ;;  %v136_v25 = vand.u32 8388607, %v129_v21  ;;  %vm130_vm10 = vcmp.le.f32.partialorder %v129_v21, 0.7853982 }
  0x60   :  { %2730 = vmatpush3.bf16.msra.mxu0 %v3015_v9 }
  0x61   :  { %2731 = vmatprep.subr.bf16.mxu0 %v3372_v1  ;;  %v2473_v26 = vadd.s32 4294967169, %v133_v24  ;;  %v137_v27 = vor.u32 8388608, %v136_v25 }
  0x63   :  { %v139_v28 = vadd.s32 1, %v2473_v26  ;;  %v177_v30 = vshll.u32 %v137_v27, 8 }
  0x64   :  { %2732 = vmatpush3.bf16.msra.mxu0 %v3016_v13 }
  0x65   :  { %2733 = vmatprep.subr.bf16.mxu0 %v3372_v1  ;;  %vm140_vm2 = vcmp.gt.s32.totalorder %v139_v28, 0 }
  0x66   :  { %v141_v29 = vsel %vm140_vm2, %v139_v28, 0 }
  0x67   :  { %v142_v31 = vshrl.u32 %v141_v29, 5  ;;  %v143_v32 = vand.u32 31, %v141_v29 }
  0x68   :  { %2734 = vmatpush3.bf16.msra.mxu0 %v3017_v18 }
  0x69   :  { %2735 = vmatprep.subr.bf16.mxu0 %v3372_v1  ;;  %v144_v33 = vsub.s32 32, %v143_v32  ;;  %v146_v35 = vshll.u32 %v3374_v34, %v143_v32  ;;  %v149_v37 = vshll.u32 %v3375_v36, %v143_v32  ;;  %v152_v39 = vshll.u32 %v3376_v38, %v143_v32 }
  0x6a   :  { %v155_v41 = vshll.u32 %v3377_v40, %v143_v32  ;;  %v158_v43 = vshll.u32 %v3378_v42, %v143_v32  ;;  %vm161_vm3 = vcmp.lt.s32.totalorder %v142_v31, 1  ;;  %vm162_vm4 = vcmp.lt.s32.totalorder %v142_v31, 2 }
  0x6b   :  { %v145_v44 = vshrl.u32 %v3374_v34, %v144_v33  ;;  %v147_v45 = vshrl.u32 %v3375_v36, %v144_v33  ;;  %v150_v46 = vshrl.u32 %v3376_v38, %v144_v33  ;;  %v153_v47 = vshrl.u32 %v3377_v40, %v144_v33 }
  0x6c   :  { %2736 = vmatpush3.bf16.msra.mxu0 %v3018_v23  ;;  %v156_v48 = vshrl.u32 %v3378_v42, %v144_v33  ;;  %v159_v50 = vshrl.u32 %v3379_v49, %v144_v33  ;;  %vm163_vm5 = vcmp.lt.s32.totalorder %v142_v31, 3  ;;  %vm164_vm6 = vcmp.lt.s32.totalorder %v142_v31, 4 }
  0x6d   :  { %v148_v51 = vor.u32 %v147_v45, %v146_v35  ;;  %v151_v52 = vor.u32 %v150_v46, %v149_v37  ;;  %v154_v53 = vor.u32 %v153_v47, %v152_v39 }
  0x6e   :  { %v157_v54 = vor.u32 %v156_v48, %v155_v41  ;;  %v160_v55 = vor.u32 %v159_v50, %v158_v43 }
  0x6f   :  { %v165_v56 = vsel %vm161_vm3, %v145_v44, %v148_v51  ;;  %v166_v57 = vsel %vm164_vm6, %v154_v53, 2102212464  ;;  %v169_v58 = vsel %vm161_vm3, %v148_v51, %v151_v52  ;;  %v173_v59 = vsel %vm161_vm3, %v151_v52, %v154_v53 }
  0x70   :  { %v167_v60 = vsel %vm163_vm5, %v151_v52, %v166_v57  ;;  %v170_v61 = vsel %vm164_vm6, %v157_v54, 920167782  ;;  %v174_v62 = vsel %vm164_vm6, %v160_v55, 1326507024  ;;  %v3019_v55 = vld [vmem:[#allocation9 + $0x238] sm:$0xff]   ;;  %v3021_v57 = vld [vmem:[#allocation9 + $0x228] sm:$0xff]  }
  0x71   :  { %v171_v63 = vsel %vm163_vm5, %v154_v53, %v170_v61  ;;  %v175_v0 = vsel %vm163_vm5, %v157_v54, %v174_v62  ;;  %v168_v2 = vsel %vm162_vm4, %v165_v56, %v167_v60  ;;  %2742 = vmatpush3.bf16.msra.mxu1 %v3019_v55  ;;  %v3020_v56 = vld [vmem:[#allocation9 + $0x230] sm:$0xff]   ;;  %v3025_v60 = vld [vmem:[#allocation9 + $0x208] sm:$0xff]   ;;  %v3026_v61 = vld [vmem:[#allocation9 + $0x200] sm:$0xff]   ;;  %vm937_vm3 = vcmask 400384  }
  0x72   :  { %v172_v4 = vsel %vm162_vm4, %v169_v58, %v171_v63  ;;  %v176_v6 = vsel %vm162_vm4, %v173_v59, %v175_v0  ;;  %v184_v13 = vmul.u32 %v177_v30, %v168_v2  ;;  %2743 = vmatprep.subr.bf16.mxu1 %v3372_v1  ;;  %v3022_v58 = vld [vmem:[#allocation9 + $0x220] sm:$0xff]   ;;  %v3024_v59 = vld [vmem:[#allocation9 + $0x210] sm:$0xff]   ;;  %v3510_v63 = vld [vmem:[#allocation7 + $0x8] sm:$0xff]  ;;  %v3523_v2 = vsub.s32 1, %v3456_v5 }
  0x73   :  { %v3486_v9 = vmul.u32.u64.low %v177_v30, %v176_v6  ;;  %v3487_v10 = vmul.u32.u64.high %v177_v30, %v176_v6, %v3486_v9  ;;  %v3489_v11 = vmul.u32.u64.low %v177_v30, %v172_v4  ;;  %v3490_v12 = vmul.u32.u64.high %v177_v30, %v172_v4, %v3489_v11  ;;  %v3508_v62 = vld [vmem:[#allocation7] sm:$0xff] }
  0x74   :  { %927 = vrot.lane.b32.xlu0 %v3508_v62, %s3380_s7  ;;  %v934_v0 = vpack.c.bf16 %v3510_v63, %v3508_v62  ;;  %921 = vrot.lane.b32.xlu1 %v3508_v62, %s3381_s8  ;;  %v253_v4 = vrot.slane %v3459_v7, %v3523_v2  ;;  %vm1005_vm4 = vcmask 1043456   ;;  %vm1006_vm5 = vcmask 1044480  }
  0x75   :  { %vm186_vm7 = vc.u32 %v3487_v10, %v3489_v11  ;;  %v187_v14 = vadd.s32 1, %v3490_v12  ;;  %v185_v27 = vadd.s32 %v3489_v11, %v3487_v10  ;;  %2744 = vmatpush3.bf16.msra.mxu1 %v3020_v56  ;;  %vm1001_vm6 = vcmask 203776  }
  0x76   :  { %2745 = vmatprep.subr.bf16.mxu1 %v3372_v1 }
  0x77   :  { %v188_v15 = vsel %vm186_vm7, %v187_v14, %v3490_v12  ;;  %vm1136_vm7 = vcmask 1045504  }
  0x78   :  { %v189_v16 = vadd.s32 %v188_v15, %v184_v13  ;;  %929 = vrot.lane.b32.xlu0 %v3510_v63, %s3380_s7  ;;  %923 = vrot.lane.b32.xlu1 %v3510_v63, %s3381_s8 }
  0x79   :  { %2746 = vmatpush3.bf16.msra.mxu1 %v3021_v57 }
  0x7a   :  { %v190_v17 = vadd.s32 536870912, %v189_v16  ;;  %2747 = vmatprep.subr.bf16.mxu1 %v3372_v1 }
  0x7c   :  { %v191_v18 = vshrl.u32 %v190_v17, 30 }
  0x7d   :  { %2748 = vmatpush3.bf16.msra.mxu1 %v3022_v58 }
  0x7e   :  { %v192_v19 = vshll.u32 %v191_v18, 30  ;;  %v215_v42 = vsub.s32 4, %v191_v18  ;;  %2749 = vmatprep.subr.bf16.mxu1 %v3372_v1 }
  0x80   :  { %v193_v22 = vsub.s32 %v189_v16, %v192_v19  ;;  %v216_v44 = vsel %vm131_vm9, %v215_v42, %v191_v18  ;;  %v3029_v19 = vld [vmem:[#allocation10 + $0xec] ss:$16 sps:$4 sm:$0xff]   ;;  %v3057_v42 = vld [vmem:[#allocation10 + $0x48] ss:$16 sps:$4 sm:$0xff]  }
  0x81   :  { %v218_v45 = vsel %vm130_vm10, 0, %v216_v44  ;;  %v3060_v44 = vld [vmem:[#allocation10 + $0x40] ss:$16 sps:$4 sm:$0xff]  }
  0x82   :  { %v195_v23 = vsub.s32 0, %v193_v22  ;;  %v222_v46 = vand.u32 3, %v218_v45  ;;  %v3065_v45 = vld [vmem:[#allocation10 + $0x2c] ss:$16 sps:$4 sm:$0xff]  }
  0x84   :  { %v2474_v24 = vmin.u32 %v195_v23, %v193_v22  ;;  %vm227_vm11 = vcmp.eq.s32.totalorder %v222_v46, 2  ;;  %vm224_vm12 = vcmp.eq.s32.totalorder %v222_v46, 0  ;;  %vm223_vm13 = vcmp.lt.s32.totalorder %v222_v46, 2  ;;  %v3032_v23 = vld [vmem:[#allocation10 + $0xe4] ss:$16 sps:$4 sm:$0xff]  }
  0x85   :  { %659 = vmatprep.subr.bf16.mxu0 %v3032_v23  ;;  %v3063_v46 = vld [vmem:[#allocation10 + $0x28] ss:$16 sps:$4 sm:$0xff]  }
  0x86   :  { %v197_v25 = vclz %v2474_v24  ;;  %v3030_v24 = vld [vmem:[#allocation10 + $0xe0] ss:$16 sps:$4 sm:$0xff]  }
  0x88   :  { %v2475_v26 = vadd.s32 4294967294, %v197_v25  ;;  %v3035_v25 = vld [vmem:[#allocation10 + $0xcc] ss:$16 sps:$4 sm:$0xff]  }
  0x8a   :  { %vm2476_vm8 = vcmp.lt.s32.totalorder %v2475_v26, 0 }
  0x8b   :  { %v200_v28 = vsel %vm2476_vm8, 0, %v2475_v26  ;;  %v3033_v26 = vld [vmem:[#allocation10 + $0xc8] ss:$16 sps:$4 sm:$0xff]   ;;  %vm1137_vm8 = vcmask 1046528  }
  0x8c   :  { %v201_v29 = vsub.s32 32, %v200_v28  ;;  %v202_v30 = vshll.u32 %v193_v22, %v200_v28  ;;  %v205_v31 = vsub.s32 4294967266, %v200_v28  ;;  %v3027_v22 = vld [vmem:[#allocation10 + $0xe8] ss:$16 sps:$4 sm:$0xff]   ;;  %v3036_v28 = vld [vmem:[#allocation10 + $0xc0] ss:$16 sps:$4 sm:$0xff]  }
  0x8e   :  { %v203_v32 = vshrl.u32 %v185_v27, %v201_v29  ;;  %v206_v33 = vadd.s32 127, %v205_v31  ;;  %v3038_v27 = vld [vmem:[#allocation10 + $0xc4] ss:$16 sps:$4 sm:$0xff]   ;;  %v3041_v29 = vld [vmem:[#allocation10 + $0xac] ss:$16 sps:$4 sm:$0xff]  }
  0x8f   :  { %v3044_v31 = vld [vmem:[#allocation10 + $0xa4] ss:$16 sps:$4 sm:$0xff]  }
  0x90   :  { %v204_v34 = vor.u32 %v203_v32, %v202_v30  ;;  %v207_v35 = vshll.u32 %v206_v33, 23  ;;  %v3039_v30 = vld [vmem:[#allocation10 + $0xa8] ss:$16 sps:$4 sm:$0xff]   ;;  %v3042_v32 = vld [vmem:[#allocation10 + $0xa0] ss:$16 sps:$4 sm:$0xff]  }
  0x91   :  { %v3047_v33 = vld [vmem:[#allocation10 + $0x8c] ss:$16 sps:$4 sm:$0xff]  }
  0x92   :  { %v208_v36 = vor.u32 4788187, %v207_v35  ;;  %v211_v37 = vcvt.s32.f32 %v204_v34  ;;  %v3045_v34 = vld [vmem:[#allocation10 + $0x88] ss:$16 sps:$4 sm:$0xff]   ;;  %v3050_v35 = vld [vmem:[#allocation10 + $0x84] ss:$16 sps:$4 sm:$0xff]  }
  0x94   :  { %v209_v38 = vand.u32 2147483647, %v208_v36  ;;  %v3048_v36 = vld [vmem:[#allocation10 + $0x80] ss:$16 sps:$4 sm:$0xff]  }
  0x96   :  { %v212_v39 = vmul.f32 %v211_v37, %v209_v38  ;;  %v3053_v37 = vld [vmem:[#allocation10 + $0x6c] ss:$16 sps:$4 sm:$0xff]   ;;  %v3051_v38 = vld [vmem:[#allocation10 + $0x68] ss:$16 sps:$4 sm:$0xff]  }
  0x98   :  { %v213_v40 = vxor.u32 2147483648, %v212_v39 }
  0x9a   :  { %v214_v41 = vsel %vm131_vm9, %v213_v40, %v212_v39  ;;  %v3056_v39 = vld [vmem:[#allocation10 + $0x64] ss:$16 sps:$4 sm:$0xff]   ;;  %v3054_v40 = vld [vmem:[#allocation10 + $0x60] ss:$16 sps:$4 sm:$0xff]   ;;  %vm1132_vm9 = vcmask 105472  }
  0x9b   :  { %v217_v43 = vsel %vm130_vm10, %v3472_v20, %v214_v41  ;;  %v3023_v20 = vld [vmem:[#allocation9 + $0x218] sm:$0xff]   ;;  %vm1202_vm10 = vcmask 1042432  }
  0x9c   :  { %3131 = vcosq.f32 %v217_v43  ;;  %2750 = vmatpush3.bf16.msra.mxu1 %v3023_v20  ;;  %v3059_v41 = vld [vmem:[#allocation10 + $0x4c] ss:$16 sps:$4 sm:$0xff]  }
  0x9d   :  { %3133 = vsinq.f32 %v217_v43  ;;  %2751 = vmatprep.subr.bf16.mxu1 %v3372_v1  ;;  %v3062_v43 = vld [vmem:[#allocation10 + $0x44] ss:$16 sps:$4 sm:$0xff]  }
  0xa0   :  { %2752 = vmatpush3.bf16.msra.mxu1 %v3024_v59 }
  0xa1   :  { %2753 = vmatprep.subr.bf16.mxu1 %v3372_v1 }
  0xa4   :  { %2754 = vmatpush3.bf16.msra.mxu1 %v3025_v60 }
  0xa5   :  { %2755 = vmatprep.subr.bf16.mxu1 %v3372_v1 }
  0xa8   :  { %2756 = vmatpush3.bf16.msra.mxu1 %v3026_v61 }
  0xa9   :  { %v3132_v47 = vpop.eup %3131  ;;  %700 = vmatprep.subr.bf16.mxu1 %v3029_v19 }
  0xaa   :  { %v3134_v48 = vpop.eup %3133  ;;  %v228_v49 = vxor.u32 2147483648, %v3132_v47 }
  0xab   :  { %v225_v50 = vxor.u32 2147483648, %v3134_v48 }
  0xac   :  { %v229_v21 = vsel %vm227_vm11, %v228_v49, %v3134_v48  ;;  %v3066_v48 = vld [vmem:[#allocation10 + $0x20] ss:$16 sps:$4 sm:$0xff]   ;;  %v3071_v49 = vld [vmem:[#allocation10 + $0xc] ss:$16 sps:$4 sm:$0xff]   ;;  %vm1207_vm11 = vcmask 80896  }
  0xad   :  { %v226_v51 = vsel %vm224_vm12, %v3132_v47, %v225_v50  ;;  %v3068_v47 = vld [vmem:[#allocation10 + $0x24] ss:$16 sps:$4 sm:$0xff]   ;;  %v3069_v50 = vld [vmem:[#allocation10 + $0x8] ss:$16 sps:$4 sm:$0xff]   ;;  %vm1560_vm12 = vcmask 1041408  }
  0xae   :  { %v230_v52 = vsel %vm223_vm13, %v226_v51, %v229_v21  ;;  %v3074_v21 = vld [vmem:[#allocation10 + $0x4] ss:$16 sps:$4 sm:$0xff]   ;;  %v3072_v51 = vld [vmem:[#allocation10] ss:$16 sps:$4 sm:$0xff]  }
  0xaf   :  { %v231_v53 = vsel %vm221_vm14, nan, %v230_v52  ;;  %v3382_v52 = vmov 0  }
  0xb0   :  { %v232_v54 = vpack.c.bf16 %v231_v53, %v231_v53  ;;  %v3530_v53 = vsub.s32 2, %v3456_v5 }
  0xb2   :  { %2738 = vmatmul.mubr.bf16.vlgmr.msra.gmra.mxu0 %v232_v54  ;;  %v370_v54 = vrot.slane %v3459_v7, %v3530_v53 }
  0xb3   :  { %660 = vmatpush1.bf16.msra.mxu0 %v3030_v24  ;;  %691 = vmatprep.mubr.bf16.mxu0 %v3382_v52 }
  0xb4   :  { %661 = vmatprep.subr.bf16.mxu0 %v3038_v27 }
  0xb7   :  { %662 = vmatpush1.bf16.msra.mxu0 %v3036_v28 }
  0xb8   :  { %663 = vmatprep.subr.bf16.mxu0 %v3044_v31 }
  0xbb   :  { %664 = vmatpush1.bf16.msra.mxu0 %v3042_v32 }
  0xbc   :  { %665 = vmatprep.subr.bf16.mxu0 %v3050_v35 }
  0xbf   :  { %666 = vmatpush1.bf16.msra.mxu0 %v3048_v36 }
  0xc0   :  { %667 = vmatprep.subr.bf16.mxu0 %v3056_v39 }
  0xc3   :  { %668 = vmatpush1.bf16.msra.mxu0 %v3054_v40  ;;  %v3383_v40 = vmov 65535  }
  0xc4   :  { %669 = vmatprep.subr.bf16.mxu0 %v3062_v43 }
  0xc7   :  { %670 = vmatpush1.bf16.msra.mxu0 %v3060_v44 }
  0xc8   :  { %671 = vmatprep.subr.bf16.mxu0 %v3068_v47 }
  0xcb   :  { %672 = vmatpush1.bf16.msra.mxu0 %v3066_v48 }
  0xcc   :  { %673 = vmatprep.subr.bf16.mxu0 %v3074_v21  ;;  %v3588_v21 = vld [vmem:[#allocation9 + $0x244] sm:$0xf] }
  0xcf   :  { %674 = vmatpush1.bf16.msra.mxu0 %v3072_v51 }
  0xd0   :  { %2761 = vmatprep.subr.bf16.mxu0 %v3372_v1 }
 0x172   :  { %v336_v6 = vpop.f32.mrf.mxu0 }
 0x173   :  { %v337_v9 = vadd.f32 %v336_v6, %v253_v4  ;;  %v912_v4 = vand.u32 127, %v124_v3  ;;  %v928_v6 = vpop.permute.xlu0 %927 }
 0x174   :  { %v2739_v10 = vpop.f32.mrf.mxu0 }
 0x175   :  { %v2485_v11 = vmul.f32 -1.442695, %v337_v9  ;;  %vm916_vm15 = vcmp.lt.s32.totalorder %v912_v4, 127  ;;  %vm913_vm2 = vcmp.gt.s32.totalorder %v912_v4, 0 }
 0x176   :  { %v339_v12 = vpop.f32.mrf.mxu0  ;;  %v3539_v7 = vsel %vm916_vm15, 1.0, %v3372_v1 }
 0x177   :  { %3135 = vpow2.f32 %v2485_v11  ;;  %v930_v12 = vpop.permute.xlu0 %929 }
 0x178   :  { %v2740_v13 = vpop.f32.mrf.mxu0 }
 0x184   :  { %v3136_v14 = vpop.eup %3135 }
 0x185   :  { %v345_v15 = vadd.f32 1.0, %v3136_v14 }
 0x187   :  { %3137 = vrcp.f32 %v345_v15  ;;  %v922_v15 = vpop.permute.xlu1 %921 }
 0x18b   :  { %v924_v19 = vpop.permute.xlu1 %923 }
 0x194   :  { %v3138_v16 = vpop.eup %3137 }
 0x195   :  { %v348_v17 = vmul.f32 %v3138_v16, %v337_v9  ;;  %v3536_v9 = vsel %vm122_vm1, 65535, %v3382_v52  ;;  %v931_v16 = vmul.f32 %v3539_v7, %v928_v6 }
 0x196   :  { %v944_v13 = vand.u32 1.0|1.0, %v3536_v9 }
 0x197   :  { %v349_v18 = vpack.c.bf16 %v348_v17, %v348_v17  ;;  %v932_v17 = vmul.f32 %v3539_v7, %v930_v12 }
 0x199   :  { %2758 = vmatmul.mubr.bf16.vlgmr.msra.gmra.mxu1 %v349_v18  ;;  %v935_v3 = vpack.c.bf16 %v932_v17, %v931_v16  ;;  %v3552_v18 = vsel %vm913_vm2, 1.0, %v3372_v1  ;;  %v3076_v16 = vld [vmem:[#allocation9 + $0x30] sm:$0xff]   ;;  %v3077_v17 = vld [vmem:[#allocation9 + $0x28] sm:$0xff]  }
 0x19a   :  { %701 = vmatpush1.bf16.msra.mxu1 %v3027_v22  ;;  %732 = vmatprep.mubr.bf16.mxu1 %v3382_v52  ;;  %v925_v22 = vmul.f32 %v3552_v18, %v922_v15  ;;  %v926_v23 = vmul.f32 %v3552_v18, %v924_v19  ;;  %v3075_v15 = vld [vmem:[#allocation9 + $0x38] sm:$0xff]  }
 0x19b   :  { %702 = vmatprep.subr.bf16.mxu1 %v3035_v25  ;;  %v3561_v25 = vld [vmem:[#allocation9 + $0x240] sm:$0xf]  ;;  %v3079_v19 = vld [vmem:[#allocation9 + $0x18] sm:$0xff]  }
 0x19c   :  { %v933_v24 = vpack.c.bf16 %v926_v23, %v925_v22  ;;  %v3080_v22 = vld [vmem:[#allocation9 + $0x10] sm:$0xff]   ;;  %v3081_v23 = vld [vmem:[#allocation9 + $0x8] sm:$0xff]  }
 0x19e   :  { %703 = vmatpush1.bf16.msra.mxu1 %v3033_v26 }
 0x19f   :  { %704 = vmatprep.subr.bf16.mxu1 %v3041_v29 }
 0x1a2   :  { %705 = vmatpush1.bf16.msra.mxu1 %v3039_v30 }
 0x1a3   :  { %706 = vmatprep.subr.bf16.mxu1 %v3047_v33 }
 0x1a6   :  { %707 = vmatpush1.bf16.msra.mxu1 %v3045_v34 }
 0x1a7   :  { %708 = vmatprep.subr.bf16.mxu1 %v3053_v37 }
 0x1aa   :  { %709 = vmatpush1.bf16.msra.mxu1 %v3051_v38 }
 0x1ab   :  { %710 = vmatprep.subr.bf16.mxu1 %v3059_v41  ;;  %v1007_v41 = vsel %vm1005_vm4, 4294967295, %v3383_v40 }
 0x1ae   :  { %711 = vmatpush1.bf16.msra.mxu1 %v3057_v42 }
 0x1af   :  { %712 = vmatprep.subr.bf16.mxu1 %v3065_v45  ;;  %v3582_v45 = vsel %vm1006_vm5, %v1007_v41, 0  ;;  %v1255_v41 = vld [vmem:[#allocation7 + $0x10] sm:$0xff] }
 0x1b2   :  { %713 = vmatpush1.bf16.msra.mxu1 %v3063_v46  ;;  %v3384_v46 = vmov 1.0  }
 0x1b3   :  { %714 = vmatprep.subr.bf16.mxu1 %v3071_v49 }
 0x1b6   :  { %715 = vmatpush1.bf16.msra.mxu1 %v3069_v50 }
 0x1b7   :  { %2781 = vmatprep.subr.bf16.mxu1 %v3372_v1 }
 0x259   :  { %v453_v55 = vpop.f32.mrf.mxu1 }
 0x25a   :  { %v454_v56 = vadd.f32 %v453_v55, %v370_v54 }
 0x25b   :  { %v2759_v57 = vpop.f32.mrf.mxu1 }
 0x25c   :  { %v2494_v58 = vmul.f32 -1.442695, %v454_v56 }
 0x25d   :  { %v456_v20 = vpop.f32.mrf.mxu1 }
 0x25e   :  { %3139 = vpow2.f32 %v2494_v58 }
 0x25f   :  { %v2760_v59 = vpop.f32.mrf.mxu1 }
 0x26b   :  { %v3140_v60 = vpop.eup %3139 }
 0x26c   :  { %v462_v61 = vadd.f32 1.0, %v3140_v60 }
 0x26e   :  { %3141 = vrcp.f32 %v462_v61 }
 0x27b   :  { %v3142_v10 = vpop.eup %3141 }
 0x27c   :  { %v465_v11 = vmul.f32 %v3142_v10, %v454_v56 }
 0x27e   :  { %v466_v14 = vpack.c.bf16 %v465_v11, %v465_v11 }
 0x280   :  { %692 = vmatmul.mubr.bf16.vlgmr.msra.gmra.mxu0 %v466_v14  ;;  %733 = vmatmul.mubr.bf16.vlgmr.msra.gmra.mxu1 %v466_v14  ;;  %v3602_v14 = vld [vmem:[#allocation9 + $0x248] sm:$0xf] }
 0x281   :  { %2782 = vmatpush3.bf16.msra.mxu1 %v944_v13  ;;  %2789 = vmatprep.mubr.msk.bf16.mxu1 %vm3373_vm0, %v3372_v1 }
 0x282   :  { %2783 = vmatprep.subr.bf16.mxu1 %v3372_v1  ;;  %2777 = vmatprep.mubr.msk.bf16.mxu0 %vm3373_vm0, %v3372_v1 }
 0x283   :  { %2762 = vmatpush3.bf16.msra.mxu0 %v3075_v15 }
 0x284   :  { %2763 = vmatprep.subr.bf16.mxu0 %v3372_v1 }
 0x285   :  { %2784 = vmatpush3.bf16.msra.mxu1 %v935_v3  ;;  %v3078_v3 = vld [vmem:[#allocation9 + $0x20] sm:$0xff]  }
 0x286   :  { %2785 = vmatprep.subr.bf16.mxu1 %v3372_v1 }
 0x287   :  { %2764 = vmatpush3.bf16.msra.mxu0 %v3076_v16 }
 0x288   :  { %2765 = vmatprep.subr.bf16.mxu0 %v3372_v1 }
 0x289   :  { %2786 = vmatpush3.bf16.msra.mxu1 %v934_v0 }
 0x28a   :  { %2787 = vmatprep.subr.bf16.mxu1 %v3372_v1 }
 0x28b   :  { %2766 = vmatpush3.bf16.msra.mxu0 %v3077_v17 }
 0x28c   :  { %2767 = vmatprep.subr.bf16.mxu0 %v3372_v1 }
 0x28d   :  { %2788 = vmatpush3.bf16.msra.mxu1 %v933_v24  ;;  %v3082_v24 = vld [vmem:[#allocation9] sm:$0xff]  }
 0x28e   :  { %2793 = vmatprep.subr.bf16.mxu1 %v3372_v1 }
 0x28f   :  { %2768 = vmatpush3.bf16.msra.mxu0 %v3078_v3 }
 0x290   :  { %2790 = vmatmul.mubr.msk.bf16.vlgmr.msra.gmra.mxu1 %vm937_vm3, %v3561_v25  ;;  %2769 = vmatprep.subr.bf16.mxu0 %v3372_v1 }
 0x291   :  { %2797 = vmatprep.mubr.msk.bf16.mxu1 %vm3373_vm0, %v3372_v1 }
 0x293   :  { %2770 = vmatpush3.bf16.msra.mxu0 %v3079_v19 }
 0x294   :  { %2771 = vmatprep.subr.bf16.mxu0 %v3372_v1 }
 0x297   :  { %2772 = vmatpush3.bf16.msra.mxu0 %v3080_v22 }
 0x298   :  { %2773 = vmatprep.subr.bf16.mxu0 %v3372_v1 }
 0x29b   :  { %2774 = vmatpush3.bf16.msra.mxu0 %v3081_v23 }
 0x29c   :  { %2775 = vmatprep.subr.bf16.mxu0 %v3372_v1 }
 0x29f   :  { %2776 = vmatpush3.bf16.msra.mxu0 %v3082_v24 }
 0x2a0   :  { %2809 = vmatprep.subr.bf16.mxu0 %v3372_v1 }
 0x340   :  { %v3568_v26 = vpop.f32.mrf.mxu0  ;;  %v3570_v27 = vpop.f32.mrf.mxu1 }
 0x342   :  { %v3572_v62 = vpop.f32.mrf.mxu0  ;;  %v3574_v63 = vpop.f32.mrf.mxu1 }
 0x344   :  { %v697_v0 = vpop.f32.mrf.mxu0  ;;  %v738_v28 = vpop.f32.mrf.mxu1 }
 0x345   :  { %v793_v0 = vld [vmem:[#allocation6] sm:$0xff]  ;;  %v794_v28 = vld [vmem:[#allocation6 + $0x8] sm:$0xff] }
 0x346   :  { %v698_v29 = vpop.f32.mrf.mxu0  ;;  %v739_v30 = vpop.f32.mrf.mxu1 }
 0x347   :  { %v795_v29 = vpack.c.bf16 %v794_v28, %v793_v0 }
 0x349   :  { %2778 = vmatmul.mubr.bf16.vlgmr.msra.gmra.mxu0 %v795_v29 }
 0x34a   :  { %2811 = vmatprep.mubr.msk.bf16.mxu0 %vm3373_vm0, %v3372_v1 }
 0x350   :  { %v980_v31 = vpop.f32.mrf.mxu1 }
 0x351   :  { %v2539_v32 = vmul.f32 -1.442695, %v980_v31 }
 0x352   :  { %v2791_v33 = vpop.f32.mrf.mxu1 }
 0x353   :  { %3143 = vpow2.f32 %v2539_v32 }
 0x354   :  { %v983_v34 = vpop.f32.mrf.mxu1 }
 0x356   :  { %v2792_v35 = vpop.f32.mrf.mxu1 }
 0x360   :  { %v3144_v36 = vpop.eup %3143 }
 0x361   :  { %v989_v37 = vadd.f32 1.0, %v3144_v36 }
 0x363   :  { %3145 = vrcp.f32 %v989_v37 }
 0x370   :  { %v3146_v38 = vpop.eup %3145 }
 0x371   :  { %v992_v39 = vmul.f32 %v3146_v38, %v980_v31 }
 0x373   :  { %993 = vrot.lane.b32.xlu1 %v992_v39, %s3381_s8  ;;  %996 = vrot.lane.b32.xlu0 %v992_v39, %s3380_s7 }
 0x3e5   :  { %v997_v42 = vpop.permute.xlu0 %996  ;;  %v994_v44 = vpop.permute.xlu1 %993 }
 0x3e6   :  { %v998_v43 = vmul.f32 %v3539_v7, %v997_v42  ;;  %v995_v48 = vmul.f32 %v3552_v18, %v994_v44 }
 0x3e8   :  { %v1000_v47 = vpack.c.bf16 %v3384_v46, %v998_v43  ;;  %v999_v50 = vpack.c.bf16 %v992_v39, %v995_v48  ;;  %v1256_v39 = vld [vmem:[#allocation7 + $0x18] sm:$0xff] }
 0x3ea   :  { %v1010_v49 = vand.u32 %v3582_v45, %v1000_v47 }
 0x3ec   :  { %2794 = vmatpush3.bf16.msra.mxu1 %v1010_v49 }
 0x3ed   :  { %2795 = vmatprep.subr.bf16.mxu1 %v3372_v1 }
 0x3f0   :  { %2796 = vmatpush3.bf16.msra.mxu1 %v999_v50  ;;  %v1138_v50 = vsel %vm1136_vm7, 4294967295, %v3383_v40 }
 0x3f1   :  { %2801 = vmatprep.subr.bf16.mxu1 %v3372_v1 }
 0x3f3   :  { %2798 = vmatmul.mubr.msk.bf16.vlgmr.msra.gmra.mxu1 %vm1001_vm6, %v3588_v21 }
 0x3f4   :  { %2805 = vmatprep.mubr.msk.bf16.mxu1 %vm3373_vm0, %v3372_v1 }
 0x409   :  { %v3625_v42 = vpop.f32.mrf.mxu0 }
 0x40b   :  { %v2779_v43 = vpop.f32.mrf.mxu0 }
 0x40d   :  { %v3627_v44 = vpop.f32.mrf.mxu0 }
 0x40f   :  { %v2780_v47 = vpop.f32.mrf.mxu0 }
 0x4b3   :  { %v1046_v51 = vpop.f32.mrf.mxu1 }
 0x4b4   :  { %v2541_v52 = vmul.f32 -1.442695, %v1046_v51 }
 0x4b5   :  { %v2799_v54 = vpop.f32.mrf.mxu1 }
 0x4b6   :  { %3147 = vpow2.f32 %v2541_v52 }
 0x4b7   :  { %v1049_v55 = vpop.f32.mrf.mxu1 }
 0x4b9   :  { %v2800_v56 = vpop.f32.mrf.mxu1 }
 0x4c3   :  { %v3148_v57 = vpop.eup %3147 }
 0x4c4   :  { %v1055_v58 = vadd.f32 1.0, %v3148_v57  ;;  %v3635_v57 = vsel %vm1137_vm8, %v1138_v50, 0 }
 0x4c6   :  { %3149 = vrcp.f32 %v1055_v58 }
 0x4d3   :  { %v3150_v20 = vpop.eup %3149 }
 0x4d4   :  { %v1058_v59 = vmul.f32 %v3150_v20, %v1046_v51 }
 0x4d6   :  { %1059 = vrot.lane.b32.xlu1 %v1058_v59, %s3381_s8  ;;  %1062 = vrot.lane.b32.xlu0 %v1058_v59, %s3380_s7 }
 0x548   :  { %v1063_v60 = vpop.permute.xlu0 %1062  ;;  %v1060_v4 = vpop.permute.xlu1 %1059 }
 0x549   :  { %v1064_v61 = vmul.f32 %v3539_v7, %v1063_v60  ;;  %v1061_v10 = vmul.f32 %v3552_v18, %v1060_v4  ;;  %v3640_v4 = vld [vmem:[#allocation9 + $0x24c] sm:$0xf] }
 0x54b   :  { %v1066_v6 = vpack.c.bf16 %v3384_v46, %v1064_v61  ;;  %v1065_v12 = vpack.c.bf16 %v1058_v59, %v1061_v10 }
 0x54d   :  { %v1071_v11 = vand.u32 %v1066_v6, %v3582_v45 }
 0x54f   :  { %2802 = vmatpush3.bf16.msra.mxu1 %v1071_v11 }
 0x550   :  { %2803 = vmatprep.subr.bf16.mxu1 %v3372_v1 }
 0x553   :  { %2804 = vmatpush3.bf16.msra.mxu1 %v1065_v12  ;;  %v1270_v12 = vpack.c.bf16 %v1256_v39, %v1255_v41 }
 0x554   :  { %2815 = vmatprep.subr.bf16.mxu1 %v3372_v1 }
 0x556   :  { %2806 = vmatmul.mubr.msk.bf16.vlgmr.msra.gmra.mxu1 %vm1001_vm6, %v3602_v14 }
 0x557   :  { %2817 = vmatprep.mubr.msk.bf16.mxu1 %vm3373_vm0, %v3372_v1 }
 0x616   :  { %v1107_v30 = vpop.f32.mrf.mxu1 }
 0x617   :  { %v2543_v31 = vmul.f32 -1.442695, %v1107_v30 }
 0x618   :  { %v2807_v32 = vpop.f32.mrf.mxu1 }
 0x619   :  { %3151 = vpow2.f32 %v2543_v31 }
 0x61a   :  { %v1110_v33 = vpop.f32.mrf.mxu1 }
 0x61c   :  { %v2808_v34 = vpop.f32.mrf.mxu1 }
 0x626   :  { %v3152_v35 = vpop.eup %3151 }
 0x627   :  { %v1116_v36 = vadd.f32 1.0, %v3152_v35 }
 0x629   :  { %3153 = vrcp.f32 %v1116_v36 }
 0x636   :  { %v3154_v37 = vpop.eup %3153 }
 0x637   :  { %v1119_v38 = vmul.f32 %v3154_v37, %v1107_v30 }
 0x639   :  { %1123 = vrot.lane.b32.xlu1 %v1119_v38, %s3380_s7  ;;  %1120 = vrot.lane.b32.xlu0 %v1119_v38, %s3381_s8  ;;  %v1127_v51 = vrot.slane %v1119_v38, 4 }
 0x63d   :  { %1265 = vrot.lane.b32.xlu1 %v1256_v39, %s3380_s7  ;;  %1263 = vrot.lane.b32.xlu0 %v1255_v41, %s3380_s7 }
 0x641   :  { %1259 = vrot.lane.b32.xlu1 %v1256_v39, %s3381_s8  ;;  %1257 = vrot.lane.b32.xlu0 %v1255_v41, %s3381_s8 }
 0x6ab   :  { %v1124_v48 = vpop.permute.xlu1 %1123  ;;  %v1121_v49 = vpop.permute.xlu0 %1120 }
 0x6ac   :  { %v1125_v52 = vmul.f32 %v3539_v7, %v1124_v48  ;;  %v1122_v54 = vmul.f32 %v3552_v18, %v1121_v49 }
 0x6ae   :  { %v1130_v55 = vsel %vm1005_vm4, %v1125_v52, 1.0  ;;  %v1129_v56 = vsel %vm1005_vm4, %v1122_v54, %v1127_v51  ;;  %v3669_v54 = vld [vmem:[#allocation9 + $0x250] sm:$0xf] }
 0x6af   :  { %v1131_v58 = vpack.c.bf16 %v1130_v55, %v1129_v56  ;;  %v1266_v20 = vpop.permute.xlu1 %1265  ;;  %v1264_v59 = vpop.permute.xlu0 %1263 }
 0x6b0   :  { %v1268_v61 = vmul.f32 %v3539_v7, %v1266_v20  ;;  %v1267_v40 = vmul.f32 %v3539_v7, %v1264_v59 }
 0x6b1   :  { %v1141_v60 = vand.u32 %v3635_v57, %v1131_v58 }
 0x6b2   :  { %v1271_v6 = vpack.c.bf16 %v1268_v61, %v1267_v40 }
 0x6b3   :  { %2810 = vmatpush3.bf16.msra.mxu0 %v1141_v60  ;;  %v1260_v10 = vpop.permute.xlu1 %1259  ;;  %v1258_v11 = vpop.permute.xlu0 %1257 }
 0x6b4   :  { %2821 = vmatprep.subr.bf16.mxu0 %v3372_v1  ;;  %v1262_v15 = vmul.f32 %v3552_v18, %v1260_v10  ;;  %v1261_v16 = vmul.f32 %v3552_v18, %v1258_v11 }
 0x6b6   :  { %2812 = vmatmul.mubr.msk.bf16.vlgmr.msra.gmra.mxu0 %vm1132_vm9, %v3640_v4  ;;  %v1269_v17 = vpack.c.bf16 %v1262_v15, %v1261_v16 }
 0x6b7   :  { %2822 = vmatpush3.bf16.msra.mxu0 %v944_v13  ;;  %2829 = vmatprep.mubr.msk.bf16.mxu0 %vm3373_vm0, %v3372_v1 }
 0x6b8   :  { %2823 = vmatprep.subr.bf16.mxu0 %v3372_v1 }
 0x6bb   :  { %2824 = vmatpush3.bf16.msra.mxu0 %v1271_v6 }
 0x6bc   :  { %2825 = vmatprep.subr.bf16.mxu0 %v3372_v1 }
 0x6bf   :  { %2826 = vmatpush3.bf16.msra.mxu0 %v1270_v12 }
 0x6c0   :  { %2827 = vmatprep.subr.bf16.mxu0 %v3372_v1 }
 0x6c3   :  { %2828 = vmatpush3.bf16.msra.mxu0 %v1269_v17 }
 0x6c4   :  { %2849 = vmatprep.subr.bf16.mxu0 %v3372_v1 }
 0x6c6   :  { %2830 = vmatmul.mubr.msk.bf16.vlgmr.msra.gmra.mxu0 %vm937_vm3, %v3561_v25 }
 0x6c7   :  { %2851 = vmatprep.mubr.msk.bf16.mxu0 %vm3373_vm0, %v3372_v1 }
 0x776   :  { %v1177_v9 = vpop.f32.mrf.mxu0 }
 0x777   :  { %v2545_v13 = vmul.f32 -1.442695, %v1177_v9 }
 0x778   :  { %v2813_v3 = vpop.f32.mrf.mxu0 }
 0x779   :  { %3155 = vpow2.f32 %v2545_v13 }
 0x77a   :  { %v1180_v19 = vpop.f32.mrf.mxu0 }
 0x77c   :  { %v2814_v22 = vpop.f32.mrf.mxu0 }
 0x786   :  { %v3156_v23 = vpop.eup %3155  ;;  %v1306_v24 = vpop.f32.mrf.mxu0 }
 0x787   :  { %v1186_v0 = vadd.f32 1.0, %v3156_v23  ;;  %v2548_v28 = vmul.f32 -1.442695, %v1306_v24 }
 0x788   :  { %v2831_v29 = vpop.f32.mrf.mxu0 }
 0x789   :  { %3157 = vrcp.f32 %v1186_v0 }
 0x78a   :  { %3159 = vpow2.f32 %v2548_v28  ;;  %v1309_v30 = vpop.f32.mrf.mxu0 }
 0x78c   :  { %v2832_v31 = vpop.f32.mrf.mxu0 }
 0x796   :  { %v3158_v32 = vpop.eup %3157 }
 0x797   :  { %v3160_v25 = vpop.eup %3159  ;;  %v1189_v33 = vmul.f32 %v3158_v32, %v1177_v9 }
 0x798   :  { %v1315_v34 = vadd.f32 1.0, %v3160_v25 }
 0x799   :  { %1190 = vrot.lane.b32.xlu1 %v1189_v33, %s3381_s8  ;;  %1193 = vrot.lane.b32.xlu0 %v1189_v33, %s3380_s7  ;;  %v1197_v39 = vrot.slane %v1189_v33, 5 }
 0x79a   :  { %3161 = vrcp.f32 %v1315_v34 }
 0x7a7   :  { %v3162_v35 = vpop.eup %3161 }
 0x7a8   :  { %v1318_v36 = vmul.f32 %v3162_v35, %v1306_v24 }
 0x7aa   :  { %1319 = vrot.lane.b32.xlu1 %v1318_v36, %s3381_s8  ;;  %1322 = vrot.lane.b32.xlu0 %v1318_v36, %s3380_s7 }
 0x80b   :  { %v1191_v37 = vpop.permute.xlu1 %1190  ;;  %v1194_v38 = vpop.permute.xlu0 %1193 }
 0x80c   :  { %v1192_v41 = vmul.f32 %v3552_v18, %v1191_v37  ;;  %v1195_v43 = vmul.f32 %v3539_v7, %v1194_v38 }
 0x80e   :  { %v1203_v47 = vsel %vm1202_vm10, %v1192_v41, %v1197_v39  ;;  %v1200_v48 = vrot.slane %v1195_v43, 2 }
 0x810   :  { %v1204_v49 = vsel %vm1136_vm7, %v1203_v47, %v1200_v48  ;;  %v1205_v50 = vsel %vm122_vm1, %v1200_v48, 1.0 }
 0x811   :  { %v1206_v51 = vpack.c.bf16 %v1205_v50, %v1204_v49 }
 0x813   :  { %v1212_v52 = vsel %vm1006_vm5, %v1206_v51, 0 }
 0x814   :  { %2816 = vmatpush3.bf16.msra.mxu1 %v1212_v52 }
 0x815   :  { %2833 = vmatprep.subr.bf16.mxu1 %v3372_v1 }
 0x817   :  { %2818 = vmatmul.mubr.msk.bf16.vlgmr.msra.gmra.mxu1 %vm1207_vm11, %v3669_v54 }
 0x818   :  { %2837 = vmatprep.mubr.msk.bf16.mxu1 %vm3373_vm0, %v3372_v1 }
 0x81c   :  { %v1323_v55 = vpop.permute.xlu0 %1322  ;;  %v1320_v58 = vpop.permute.xlu1 %1319 }
 0x81d   :  { %v1324_v56 = vmul.f32 %v3539_v7, %v1323_v55  ;;  %v1321_v59 = vmul.f32 %v3552_v18, %v1320_v58 }
 0x81f   :  { %v1326_v20 = vpack.c.bf16 %v3384_v46, %v1324_v56  ;;  %v1325_v61 = vpack.c.bf16 %v1318_v36, %v1321_v59 }
 0x821   :  { %v1328_v60 = vand.u32 %v1326_v20, %v3582_v45 }
 0x823   :  { %2834 = vmatpush3.bf16.msra.mxu1 %v1328_v60 }
 0x824   :  { %2835 = vmatprep.subr.bf16.mxu1 %v3372_v1 }
 0x827   :  { %2836 = vmatpush3.bf16.msra.mxu1 %v1325_v61 }
 0x828   :  { %2841 = vmatprep.subr.bf16.mxu1 %v3372_v1 }
 0x82a   :  { %2838 = vmatmul.mubr.msk.bf16.vlgmr.msra.gmra.mxu1 %vm1001_vm6, %v3588_v21 }
 0x82b   :  { %2845 = vmatprep.mubr.msk.bf16.mxu1 %vm3373_vm0, %v3372_v1 }
 0x8d7   :  { %v3686_v40 = vpop.f32.mrf.mxu1 }
 0x8d9   :  { %v2819_v6 = vpop.f32.mrf.mxu1 }
 0x8db   :  { %v1251_v10 = vpop.f32.mrf.mxu1 }
 0x8dd   :  { %v2820_v11 = vpop.f32.mrf.mxu1 }
 0x8ea   :  { %v1364_v12 = vpop.f32.mrf.mxu1 }
 0x8eb   :  { %v2550_v15 = vmul.f32 -1.442695, %v1364_v12 }
 0x8ec   :  { %v2839_v16 = vpop.f32.mrf.mxu1 }
 0x8ed   :  { %3163 = vpow2.f32 %v2550_v15 }
 0x8ee   :  { %v1367_v17 = vpop.f32.mrf.mxu1 }
 0x8f0   :  { %v2840_v9 = vpop.f32.mrf.mxu1 }
 0x8fa   :  { %v3164_v13 = vpop.eup %3163 }
 0x8fb   :  { %v1373_v3 = vadd.f32 1.0, %v3164_v13 }
 0x8fd   :  { %3165 = vrcp.f32 %v1373_v3 }
 0x90a   :  { %v3166_v19 = vpop.eup %3165 }
 0x90b   :  { %v1376_v22 = vmul.f32 %v3166_v19, %v1364_v12 }
 0x90d   :  { %1377 = vrot.lane.b32.xlu1 %v1376_v22, %s3381_s8  ;;  %1380 = vrot.lane.b32.xlu0 %v1376_v22, %s3380_s7 }
 0x97f   :  { %v1381_v21 = vpop.permute.xlu0 %1380  ;;  %v1378_v24 = vpop.permute.xlu1 %1377 }
 0x980   :  { %v1382_v23 = vmul.f32 %v3539_v7, %v1381_v21  ;;  %v1379_v28 = vmul.f32 %v3552_v18, %v1378_v24 }
 0x982   :  { %v1384_v0 = vpack.c.bf16 %v3384_v46, %v1382_v23  ;;  %v1383_v30 = vpack.c.bf16 %v1376_v22, %v1379_v28  ;;  %v3085_v28 = vld [vmem:[#allocation9 + $0x68] sm:$0xff]  }
 0x984   :  { %v1386_v29 = vand.u32 %v1384_v0, %v3582_v45  ;;  %v3084_v0 = vld [vmem:[#allocation9 + $0x70] sm:$0xff]  }
 0x986   :  { %2842 = vmatpush3.bf16.msra.mxu1 %v1386_v29  ;;  %v3086_v29 = vld [vmem:[#allocation9 + $0x60] sm:$0xff]  }
 0x987   :  { %2843 = vmatprep.subr.bf16.mxu1 %v3372_v1 }
 0x98a   :  { %2844 = vmatpush3.bf16.msra.mxu1 %v1383_v30  ;;  %v3087_v30 = vld [vmem:[#allocation9 + $0x58] sm:$0xff]  }
 0x98b   :  { %2855 = vmatprep.subr.bf16.mxu1 %v3372_v1 }
 0x98d   :  { %2846 = vmatmul.mubr.msk.bf16.vlgmr.msra.gmra.mxu1 %vm1001_vm6, %v3602_v14 }
 0x98e   :  { %2857 = vmatprep.mubr.msk.bf16.mxu1 %vm3373_vm0, %v3372_v1 }
 0xa4d   :  { %v1422_v31 = vpop.f32.mrf.mxu1 }
 0xa4e   :  { %v2552_v32 = vmul.f32 -1.442695, %v1422_v31 }
 0xa4f   :  { %v2847_v46 = vpop.f32.mrf.mxu1 }
 0xa50   :  { %3167 = vpow2.f32 %v2552_v32  ;;  %v3090_v32 = vld [vmem:[#allocation9 + $0x40] sm:$0xff]  }
 0xa51   :  { %v1425_v25 = vpop.f32.mrf.mxu1 }
 0xa53   :  { %v2848_v33 = vpop.f32.mrf.mxu1 }
 0xa5d   :  { %v3168_v45 = vpop.eup %3167 }
 0xa5e   :  { %v1431_v34 = vadd.f32 1.0, %v3168_v45 }
 0xa60   :  { %3169 = vrcp.f32 %v1431_v34 }
 0xa6d   :  { %v3170_v35 = vpop.eup %3169 }
 0xa6e   :  { %v1434_v36 = vmul.f32 %v3170_v35, %v1422_v31  ;;  %v3089_v31 = vld [vmem:[#allocation9 + $0x48] sm:$0xff]  }
 0xa70   :  { %1438 = vrot.lane.b32.xlu1 %v1434_v36, %s3380_s7  ;;  %1435 = vrot.lane.b32.xlu0 %v1434_v36, %s3381_s8  ;;  %v1442_v38 = vrot.slane %v1434_v36, 4 }
 0xae2   :  { %v1439_v37 = vpop.permute.xlu1 %1438  ;;  %v1436_v14 = vpop.permute.xlu0 %1435 }
 0xae3   :  { %v1440_v39 = vmul.f32 %v3539_v7, %v1439_v37  ;;  %v1437_v41 = vmul.f32 %v3552_v18, %v1436_v14  ;;  %v3735_v37 = vld [vmem:[#allocation12] sm:$0xff]  ;;  %v1584_v14 = vsub.s32 3, %v3456_v5 }
 0xae5   :  { %v1445_v43 = vsel %vm1005_vm4, %v1440_v39, 1.0  ;;  %v1444_v47 = vsel %vm1005_vm4, %v1437_v41, %v1442_v38  ;;  %v1580_v38 = vrot.slane %v3735_v37, %v3530_v53 }
 0xae6   :  { %v1446_v48 = vpack.c.bf16 %v1445_v43, %v1444_v47  ;;  %v1585_v47 = vrot.slane %v3735_v37, %v1584_v14 }
 0xae8   :  { %v1448_v49 = vand.u32 %v1446_v48, %v3635_v57 }
 0xaea   :  { %2850 = vmatpush3.bf16.msra.mxu0 %v1448_v49 }
 0xaeb   :  { %2861 = vmatprep.subr.bf16.mxu0 %v3372_v1 }
 0xaed   :  { %2852 = vmatmul.mubr.msk.bf16.vlgmr.msra.gmra.mxu0 %vm1132_vm9, %v3640_v4 }
 0xaee   :  { %2877 = vmatprep.mubr.msk.bf16.mxu0 %vm3373_vm0, %v3372_v1 }
 0xbad   :  { %v1484_v50 = vpop.f32.mrf.mxu0 }
 0xbae   :  { %v2554_v51 = vmul.f32 -1.442695, %v1484_v50 }
 0xbaf   :  { %v2853_v52 = vpop.f32.mrf.mxu0 }
 0xbb0   :  { %3171 = vpow2.f32 %v2554_v51  ;;  %v3743_v51 = vld [vmem:[#allocation12 + $0x8] sm:$0xff] }
 0xbb1   :  { %v1487_v55 = vpop.f32.mrf.mxu0  ;;  %v1608_v52 = vrot.slane %v3743_v51, %v1584_v14 }
 0xbb3   :  { %v2854_v56 = vpop.f32.mrf.mxu0 }
 0xbb4   :  { %v3747_v56 = vsub.s32 0, %v3456_v5 }
 0xbbd   :  { %v3172_v58 = vpop.eup %3171 }
 0xbbe   :  { %v1493_v20 = vadd.f32 1.0, %v3172_v58 }
 0xbc0   :  { %3173 = vrcp.f32 %v1493_v20 }
 0xbcd   :  { %v3174_v59 = vpop.eup %3173 }
 0xbce   :  { %v1496_v57 = vmul.f32 %v3174_v59, %v1484_v50 }
 0xbd0   :  { %1497 = vrot.lane.b32.xlu1 %v1496_v57, %s3381_s8  ;;  %1500 = vrot.lane.b32.xlu0 %v1496_v57, %s3380_s7  ;;  %v1504_v61 = vrot.slane %v1496_v57, 5 }
 0xc42   :  { %v1498_v60 = vpop.permute.xlu1 %1497  ;;  %v1501_v4 = vpop.permute.xlu0 %1500 }
 0xc43   :  { %v1499_v6 = vmul.f32 %v3552_v18, %v1498_v60  ;;  %v1502_v10 = vmul.f32 %v3539_v7, %v1501_v4  ;;  %v3083_v7 = vld [vmem:[#allocation9 + $0x78] sm:$0xff]  }
 0xc44   :  { %2862 = vmatpush3.bf16.msra.mxu0 %v3083_v7  ;;  %v3098_v7 = vld [vmem:[#allocation9 + $0x80] sm:$0xff]  }
 0xc45   :  { %v1509_v11 = vsel %vm1202_vm10, %v1499_v6, %v1504_v61  ;;  %v1507_v12 = vrot.slane %v1502_v10, 2  ;;  %2863 = vmatprep.subr.bf16.mxu0 %v3372_v1  ;;  %v3091_v10 = vld [vmem:[#allocation9 + $0xb8] sm:$0xff]  }
 0xc47   :  { %v1510_v15 = vsel %vm1136_vm7, %v1509_v11, %v1507_v12  ;;  %v1511_v16 = vsel %vm122_vm1, %v1507_v12, 1.0  ;;  %v3092_v11 = vld [vmem:[#allocation9 + $0xb0] sm:$0xff]   ;;  %v3093_v12 = vld [vmem:[#allocation9 + $0xa8] sm:$0xff]  }
 0xc48   :  { %v1512_v17 = vpack.c.bf16 %v1511_v16, %v1510_v15  ;;  %2864 = vmatpush3.bf16.msra.mxu0 %v3084_v0  ;;  %v3094_v15 = vld [vmem:[#allocation9 + $0xa0] sm:$0xff]   ;;  %v3095_v16 = vld [vmem:[#allocation9 + $0x98] sm:$0xff]  }
 0xc49   :  { %2865 = vmatprep.subr.bf16.mxu0 %v3372_v1 }
 0xc4a   :  { %v1514_v9 = vsel %vm1006_vm5, %v1512_v17, 0  ;;  %v3096_v17 = vld [vmem:[#allocation9 + $0x90] sm:$0xff]  }
 0xc4b   :  { %2856 = vmatpush3.bf16.msra.mxu1 %v1514_v9  ;;  %v3097_v9 = vld [vmem:[#allocation9 + $0x88] sm:$0xff]  }
 0xc4c   :  { %2881 = vmatprep.subr.bf16.mxu1 %v3372_v1  ;;  %2866 = vmatpush3.bf16.msra.mxu0 %v3085_v28 }
 0xc4d   :  { %2867 = vmatprep.subr.bf16.mxu0 %v3372_v1 }
 0xc4e   :  { %2858 = vmatmul.mubr.msk.bf16.vlgmr.msra.gmra.mxu1 %vm1207_vm11, %v3669_v54 }
 0xc4f   :  { %2897 = vmatprep.mubr.msk.bf16.mxu1 %vm3373_vm0, %v3372_v1  ;;  %2882 = vmatpush3.bf16.msra.mxu1 %v3091_v10 }
 0xc50   :  { %2868 = vmatpush3.bf16.msra.mxu0 %v3086_v29  ;;  %2883 = vmatprep.subr.bf16.mxu1 %v3372_v1 }
 0xc51   :  { %2869 = vmatprep.subr.bf16.mxu0 %v3372_v1 }
 0xc53   :  { %2884 = vmatpush3.bf16.msra.mxu1 %v3092_v11 }
 0xc54   :  { %2870 = vmatpush3.bf16.msra.mxu0 %v3087_v30  ;;  %2885 = vmatprep.subr.bf16.mxu1 %v3372_v1 }
 0xc55   :  { %2871 = vmatprep.subr.bf16.mxu0 %v3372_v1 }
 0xc57   :  { %2886 = vmatpush3.bf16.msra.mxu1 %v3093_v12 }
 0xc58   :  { %2887 = vmatprep.subr.bf16.mxu1 %v3372_v1 }
 0xc5b   :  { %2888 = vmatpush3.bf16.msra.mxu1 %v3094_v15 }
 0xc5c   :  { %2889 = vmatprep.subr.bf16.mxu1 %v3372_v1 }
 0xc5f   :  { %2890 = vmatpush3.bf16.msra.mxu1 %v3095_v16 }
 0xc60   :  { %2891 = vmatprep.subr.bf16.mxu1 %v3372_v1 }
 0xc63   :  { %2892 = vmatpush3.bf16.msra.mxu1 %v3096_v17 }
 0xc64   :  { %2893 = vmatprep.subr.bf16.mxu1 %v3372_v1 }
 0xc67   :  { %2894 = vmatpush3.bf16.msra.mxu1 %v3097_v9 }
 0xc68   :  { %2895 = vmatprep.subr.bf16.mxu1 %v3372_v1 }
 0xc6b   :  { %2896 = vmatpush3.bf16.msra.mxu1 %v3098_v7 }
 0xc6c   :  { %2921 = vmatprep.subr.bf16.mxu1 %v3372_v1 }
 0xd0e   :  { %v1550_v18 = vpop.f32.mrf.mxu1 }
 0xd0f   :  { %v1557_v13 = vrot.slane %v1550_v18, 7  ;;  %v3099_v18 = vld [vmem:[#allocation9 + $0xf8] sm:$0xff]  }
 0xd10   :  { %v2859_v3 = vpop.f32.mrf.mxu1 }
 0xd11   :  { %v1559_v19 = vsel %vm122_vm1, %v3686_v40, %v1557_v13  ;;  %v3088_v40 = vld [vmem:[#allocation9 + $0x50] sm:$0xff]   ;;  %v3101_v3 = vld [vmem:[#allocation9 + $0xe8] sm:$0xff]  }
 0xd12   :  { %v1553_v22 = vpop.f32.mrf.mxu1  ;;  %v1561_v21 = vsel %vm1560_vm12, %v1559_v19, 0.0  ;;  %v1566_v23 = vmul.f32 %v1559_v19, %v1559_v19  ;;  %2872 = vmatpush3.bf16.msra.mxu0 %v3088_v40  ;;  %v3100_v13 = vld [vmem:[#allocation9 + $0xf0] sm:$0xff]  }
 0xd13   :  { %1562 = vadd.xlane.f32.xlu0 %v1561_v21  ;;  %2873 = vmatprep.subr.bf16.mxu0 %v3372_v1  ;;  %v3103_v22 = vld [vmem:[#allocation9 + $0xd8] sm:$0xff]  }
 0xd14   :  { %v2860_v24 = vpop.f32.mrf.mxu1  ;;  %v1567_v54 = vsel %vm1560_vm12, %v1566_v23, 0.0 }
 0xd15   :  { %1568 = vadd.xlane.f32.xlu1 %v1567_v54 }
 0xd16   :  { %2874 = vmatpush3.bf16.msra.mxu0 %v3089_v31 }
 0xd17   :  { %2875 = vmatprep.subr.bf16.mxu0 %v3372_v1 }
 0xd1a   :  { %2876 = vmatpush3.bf16.msra.mxu0 %v3090_v32 }
 0xd1b   :  { %2901 = vmatprep.subr.bf16.mxu0 %v3372_v1 }
 0xd9c   :  { %v1563_v46 = vpop.xlane.xlu0 %1562 }
 0xd9d   :  { %v1565_v25 = vmul.f32 0.0078125, %v1563_v46 }
 0xd9e   :  { %v1569_v33 = vpop.xlane.xlu1 %1568 }
 0xd9f   :  { %v1572_v45 = vmul.f32 %v1565_v25, %v1565_v25  ;;  %v1570_v34 = vmul.f32 0.0078125, %v1569_v33  ;;  %v1571_v39 = vsub.f32 %v1559_v19, %v1565_v25  ;;  %v3102_v19 = vld [vmem:[#allocation9 + $0xe0] sm:$0xff]   ;;  %v3775_v25 = vsub.s32 5, %v3456_v5 }
 0xda1   :  { %v1573_v35 = vsub.f32 %v1570_v34, %v1572_v45  ;;  %v3777_v34 = vld [vmem:[#allocation12 + $0x10] sm:$0xff] }
 0xda3   :  { %v1574_v36 = vadd.f32 1e-05, %v1573_v35  ;;  %v744_v35 = vrot.slane %v3777_v34, %v3775_v25 }
 0xda5   :  { %3175 = vrsqrt.f32 %v1574_v36  ;;  %v3782_v36 = vsub.s32 6, %v3456_v5  ;;  %v745_v14 = vadd.f32 %v744_v35, %v3568_v26 }
 0xdb2   :  { %v3176_v41 = vpop.eup %3175 }
 0xdb3   :  { %v1576_v43 = vmul.f32 %v3176_v41, %v1571_v39  ;;  %v1734_v41 = vrot.slane %v3735_v37, %v3462_v8 }
 0xdb5   :  { %v1581_v48 = vmul.f32 %v1580_v38, %v1576_v43  ;;  %v757_v38 = vrot.slane %v3777_v34, %v3782_v36 }
 0xdb7   :  { %v1586_v49 = vadd.f32 %v1585_v47, %v1581_v48  ;;  %v749_v47 = vrot.slane %v745_v14, %v3747_v56  ;;  %v1740_v48 = vrot.slane %v3735_v37, %v3775_v25 }
 0xdb9   :  { %v1587_v50 = vpack.c.bf16 %v1586_v49, %v1586_v49 }
 0xdbb   :  { %2878 = vmatmul.mubr.bf16.vlgmr.msra.gmra.mxu0 %v1587_v50  ;;  %v758_v50 = vadd.f32 %v757_v38, %v3572_v62 }
 0xdbc   :  { %2917 = vmatprep.mubr.msk.bf16.mxu0 %vm3373_vm0, %v3372_v1  ;;  %2902 = vmatpush3.bf16.msra.mxu0 %v3099_v18 }
 0xdbd   :  { %2903 = vmatprep.subr.bf16.mxu0 %v3372_v1  ;;  %v766_v16 = vrot.slane %v758_v50, %v3523_v2 }
 0xdc0   :  { %2904 = vmatpush3.bf16.msra.mxu0 %v3100_v13 }
 0xdc1   :  { %2905 = vmatprep.subr.bf16.mxu0 %v3372_v1 }
 0xdc4   :  { %2906 = vmatpush3.bf16.msra.mxu0 %v3101_v3 }
 0xdc5   :  { %2907 = vmatprep.subr.bf16.mxu0 %v3372_v1 }
 0xdc8   :  { %2908 = vmatpush3.bf16.msra.mxu0 %v3102_v19 }
 0xdc9   :  { %2909 = vmatprep.subr.bf16.mxu0 %v3372_v1 }
 0xdcc   :  { %2910 = vmatpush3.bf16.msra.mxu0 %v3103_v22 }
 0xdcd   :  { %2911 = vmatprep.subr.bf16.mxu0 %v3372_v1 }
 0xe7b   :  { %v1691_v55 = vpop.f32.mrf.mxu0 }
 0xe7c   :  { %v1692_v58 = vadd.f32 %v1691_v55, %v1608_v52  ;;  %v1743_v55 = vadd.f32 1.0, %v749_v47  ;;  %v3113_v47 = vld [vmem:[#allocation9 + $0x108] sm:$0xff]  }
 0xe7d   :  { %v2879_v20 = vpop.f32.mrf.mxu0 }
 0xe7e   :  { %v3750_v59 = vrot.slane %v1692_v58, %v3747_v56  ;;  %v3756_v61 = vrot.slane %v1692_v58, %v3523_v2 }
 0xe7f   :  { %v1694_v57 = vpop.f32.mrf.mxu0 }
 0xe80   :  { %1705 = vadd.xlane.f32.xlu0 %v3750_v59  ;;  %v1711_v60 = vmul.f32 %v3750_v59, %v3750_v59  ;;  %v1712_v6 = vmul.f32 %v3756_v61, %v3756_v61  ;;  %v762_v57 = vrot.slane %v758_v50, %v3747_v56 }
 0xe81   :  { %v2880_v4 = vpop.f32.mrf.mxu0 }
 0xe82   :  { %1713 = vadd.xlane.f32.xlu1 %v1711_v60 }
 0xe84   :  { %1707 = vadd.xlane.f32.xlu0 %v3756_v61 }
 0xe88   :  { %1715 = vadd.xlane.f32.xlu0 %v1712_v6 }
 0xf09   :  { %v1706_v21 = vpop.xlane.xlu0 %1705 }
 0xf0a   :  { %v1709_v23 = vmul.f32 0.0078125, %v1706_v21 }
 0xf0b   :  { %v1714_v24 = vpop.xlane.xlu1 %1713 }
 0xf0c   :  { %v1721_v54 = vmul.f32 %v1709_v23, %v1709_v23  ;;  %v1717_v0 = vmul.f32 0.0078125, %v1714_v24  ;;  %v1719_v39 = vsub.f32 %v3750_v59, %v1709_v23  ;;  %v753_v59 = vrot.slane %v745_v14, %v3523_v2  ;;  %v3104_v24 = vld [vmem:[#allocation9 + $0xd0] sm:$0xff]  }
 0xf0d   :  { %v1708_v28 = vpop.xlane.xlu0 %1707  ;;  %2912 = vmatpush3.bf16.msra.mxu0 %v3104_v24 }
 0xf0e   :  { %v1723_v29 = vsub.f32 %v1717_v0, %v1721_v54  ;;  %v1710_v30 = vmul.f32 0.0078125, %v1708_v28  ;;  %v1744_v11 = vadd.f32 1.0, %v753_v59  ;;  %2913 = vmatprep.subr.bf16.mxu0 %v3372_v1  ;;  %v3105_v54 = vld [vmem:[#allocation9 + $0xc8] sm:$0xff]   ;;  %v3106_v0 = vld [vmem:[#allocation9 + $0xc0] sm:$0xff]   ;;  %v1784_v28 = vrot.slane %v3743_v51, %v3462_v8 }
 0xf10   :  { %v1725_v40 = vadd.f32 1e-05, %v1723_v29  ;;  %v1722_v32 = vmul.f32 %v1710_v30, %v1710_v30  ;;  %v1720_v26 = vsub.f32 %v3756_v61, %v1710_v30  ;;  %v815_v30 = vrot.slane %v3743_v51, %v3530_v53  ;;  %v3107_v53 = vld [vmem:[#allocation9 + $0x138] sm:$0xff]  }
 0xf11   :  { %v1716_v31 = vpop.xlane.xlu0 %1715  ;;  %2914 = vmatpush3.bf16.msra.mxu0 %v3105_v54 }
 0xf12   :  { %3177 = vrsqrt.f32 %v1725_v40  ;;  %v1718_v46 = vmul.f32 0.0078125, %v1716_v31  ;;  %2915 = vmatprep.subr.bf16.mxu0 %v3372_v1 }
 0xf14   :  { %v1724_v33 = vsub.f32 %v1718_v46, %v1722_v32  ;;  %v899_v46 = vadd.f32 %v3625_v42, %v815_v30  ;;  %v3108_v42 = vld [vmem:[#allocation9 + $0x130] sm:$0xff]  }
 0xf15   :  { %2916 = vmatpush3.bf16.msra.mxu0 %v3106_v0 }
 0xf16   :  { %v1726_v45 = vadd.f32 1e-05, %v1724_v33  ;;  %2941 = vmatprep.subr.bf16.mxu0 %v3372_v1  ;;  %v902_v33 = vadd.f32 %v3627_v44, %v815_v30  ;;  %v3109_v44 = vld [vmem:[#allocation9 + $0x128] sm:$0xff]   ;;  %v3115_v30 = vld [vmem:[#allocation9 + $0x178] sm:$0xff]  }
 0xf18   :  { %3179 = vrsqrt.f32 %v1726_v45 }
 0xf1f   :  { %v3178_v43 = vpop.eup %3177 }
 0xf20   :  { %v1729_v49 = vmul.f32 %v3178_v43, %v1719_v39  ;;  %v3110_v39 = vld [vmem:[#allocation9 + $0x120] sm:$0xff]   ;;  %v3112_v43 = vld [vmem:[#allocation9 + $0x110] sm:$0xff]  }
 0xf22   :  { %v1735_v52 = vmul.f32 %v1734_v41, %v1729_v49  ;;  %v1897_v49 = vrot.slane %v3743_v51, %v3775_v25 }
 0xf24   :  { %v1741_v58 = vadd.f32 %v1740_v48, %v1735_v52 }
 0xf25   :  { %v3180_v20 = vpop.eup %3179 }
 0xf26   :  { %v1730_v60 = vmul.f32 %v3180_v20, %v1720_v26  ;;  %v1745_v4 = vmul.f32 %v1743_v55, %v1741_v58 }
 0xf28   :  { %v1736_v6 = vmul.f32 %v1734_v41, %v1730_v60  ;;  %v1747_v10 = vadd.f32 %v1745_v4, %v762_v57  ;;  %v3111_v41 = vld [vmem:[#allocation9 + $0x118] sm:$0xff]  }
 0xf2a   :  { %v1742_v12 = vadd.f32 %v1740_v48, %v1736_v6  ;;  %v2564_v15 = vmul.f32 -1.442695, %v1747_v10  ;;  %v3114_v48 = vld [vmem:[#allocation9 + $0x100] sm:$0xff]  }
 0xf2c   :  { %v1746_v62 = vmul.f32 %v1744_v11, %v1742_v12  ;;  %3181 = vpow2.f32 %v2564_v15 }
 0xf2e   :  { %v1748_v17 = vadd.f32 %v1746_v62, %v766_v16 }
 0xf30   :  { %v2565_v9 = vmul.f32 -1.442695, %v1748_v17 }
 0xf32   :  { %3183 = vpow2.f32 %v2565_v9 }
 0xf39   :  { %v3182_v61 = vpop.eup %3181 }
 0xf3a   :  { %v1755_v7 = vadd.f32 1.0, %v3182_v61 }
 0xf3c   :  { %3185 = vrcp.f32 %v1755_v7 }
 0xf3f   :  { %v3184_v18 = vpop.eup %3183 }
 0xf40   :  { %v1756_v13 = vadd.f32 1.0, %v3184_v18 }
 0xf42   :  { %3187 = vrcp.f32 %v1756_v13 }
 0xf49   :  { %v3186_v3 = vpop.eup %3185 }
 0xf4a   :  { %v1761_v22 = vmul.f32 %v3186_v3, %v1747_v10 }
 0xf4f   :  { %v3188_v19 = vpop.eup %3187 }
 0xf50   :  { %v1762_v21 = vmul.f32 %v3188_v19, %v1748_v17  ;;  %v2026_v19 = vrot.slane %v3743_v51, %v3782_v36 }
 0xf52   :  { %v1763_v23 = vpack.c.bf16 %v1762_v21, %v1761_v22 }
 0xf54   :  { %2898 = vmatmul.mubr.bf16.vlgmr.msra.gmra.mxu1 %v1763_v23 }
 0xf55   :  { %2937 = vmatprep.mubr.msk.bf16.mxu1 %vm3373_vm0, %v3372_v1  ;;  %2922 = vmatpush3.bf16.msra.mxu1 %v3107_v53 }
 0xf56   :  { %2923 = vmatprep.subr.bf16.mxu1 %v3372_v1 }
 0xf59   :  { %2924 = vmatpush3.bf16.msra.mxu1 %v3108_v42 }
 0xf5a   :  { %2925 = vmatprep.subr.bf16.mxu1 %v3372_v1 }
 0xf5d   :  { %2926 = vmatpush3.bf16.msra.mxu1 %v3109_v44 }
 0xf5e   :  { %2927 = vmatprep.subr.bf16.mxu1 %v3372_v1 }
 0xf61   :  { %2928 = vmatpush3.bf16.msra.mxu1 %v3110_v39 }
 0xf62   :  { %2929 = vmatprep.subr.bf16.mxu1 %v3372_v1 }
 0xf65   :  { %2930 = vmatpush3.bf16.msra.mxu1 %v3111_v41 }
 0xf66   :  { %2931 = vmatprep.subr.bf16.mxu1 %v3372_v1 }
 0xf69   :  { %2932 = vmatpush3.bf16.msra.mxu1 %v3112_v43 }
 0xf6a   :  { %2933 = vmatprep.subr.bf16.mxu1 %v3372_v1 }
 0xf6d   :  { %2934 = vmatpush3.bf16.msra.mxu1 %v3113_v47 }
 0xf6e   :  { %2935 = vmatprep.subr.bf16.mxu1 %v3372_v1 }
 0xf71   :  { %2936 = vmatpush3.bf16.msra.mxu1 %v3114_v48 }
 0xf72   :  { %2961 = vmatprep.subr.bf16.mxu1 %v3372_v1 }
0x1014   :  { %v1867_v29 = vpop.f32.mrf.mxu1 }
0x1015   :  { %v1868_v31 = vadd.f32 %v1867_v29, %v1784_v28 }
0x1016   :  { %v2899_v40 = vpop.f32.mrf.mxu1 }
0x1017   :  { %v3809_v14 = vadd.f32 %v1868_v31, %v899_v46  ;;  %v3116_v40 = vld [vmem:[#allocation9 + $0x170] sm:$0xff]   ;;  %v3117_v31 = vld [vmem:[#allocation9 + $0x168] sm:$0xff]   ;;  %v3119_v46 = vld [vmem:[#allocation9 + $0x158] sm:$0xff]  }
0x1018   :  { %v1870_v32 = vpop.f32.mrf.mxu1 }
0x1019   :  { %v1871_v45 = vadd.f32 %v1870_v32, %v1784_v28  ;;  %v3118_v32 = vld [vmem:[#allocation9 + $0x160] sm:$0xff]  }
0x101a   :  { %v2900_v35 = vpop.f32.mrf.mxu1 }
0x101b   :  { %v3811_v38 = vadd.f32 %v1871_v45, %v902_v33  ;;  %v3120_v33 = vld [vmem:[#allocation9 + $0x150] sm:$0xff]   ;;  %v3121_v45 = vld [vmem:[#allocation9 + $0x148] sm:$0xff]   ;;  %v3122_v35 = vld [vmem:[#allocation9 + $0x140] sm:$0xff]  }
0x101d   :  { %v1876_v8 = vpack.c.bf16 %v3811_v38, %v3809_v14 }
0x101f   :  { %2918 = vmatmul.mubr.bf16.vlgmr.msra.gmra.mxu0 %v1876_v8 }
0x1020   :  { %2957 = vmatprep.mubr.msk.bf16.mxu0 %vm3373_vm0, %v3372_v1  ;;  %2942 = vmatpush3.bf16.msra.mxu0 %v3115_v30 }
0x1021   :  { %2943 = vmatprep.subr.bf16.mxu0 %v3372_v1 }
0x1024   :  { %2944 = vmatpush3.bf16.msra.mxu0 %v3116_v40 }
0x1025   :  { %2945 = vmatprep.subr.bf16.mxu0 %v3372_v1 }
0x1028   :  { %2946 = vmatpush3.bf16.msra.mxu0 %v3117_v31 }
0x1029   :  { %2947 = vmatprep.subr.bf16.mxu0 %v3372_v1 }
0x102c   :  { %2948 = vmatpush3.bf16.msra.mxu0 %v3118_v32 }
0x102d   :  { %2949 = vmatprep.subr.bf16.mxu0 %v3372_v1 }
0x1030   :  { %2950 = vmatpush3.bf16.msra.mxu0 %v3119_v46 }
0x1031   :  { %2951 = vmatprep.subr.bf16.mxu0 %v3372_v1 }
0x1034   :  { %2952 = vmatpush3.bf16.msra.mxu0 %v3120_v33 }
0x1035   :  { %2953 = vmatprep.subr.bf16.mxu0 %v3372_v1 }
0x1038   :  { %2954 = vmatpush3.bf16.msra.mxu0 %v3121_v45 }
0x1039   :  { %2955 = vmatprep.subr.bf16.mxu0 %v3372_v1 }
0x103c   :  { %2956 = vmatpush3.bf16.msra.mxu0 %v3122_v35 }
0x10df   :  { %v1980_v50 = vpop.f32.mrf.mxu0 }
0x10e0   :  { %v1981_v52 = vadd.f32 %v1980_v50, %v1897_v49 }
0x10e1   :  { %v2919_v55 = vpop.f32.mrf.mxu0 }
0x10e2   :  { %v1987_v26 = vmul.f32 %v1981_v52, %v1981_v52 }
0x10e3   :  { %v1983_v58 = vpop.f32.mrf.mxu0 }
0x10e4   :  { %v1989_v20 = vmul.f32 %v1987_v26, %v1981_v52  ;;  %v1984_v59 = vadd.f32 %v1983_v58, %v1897_v49  ;;  %v769_v26 = vsub.s32 7, %v3456_v5 }
0x10e5   :  { %v2920_v57 = vpop.f32.mrf.mxu0 }
0x10e6   :  { %v1991_v60 = vmul.f32 0.044715, %v1989_v20  ;;  %v1988_v4 = vmul.f32 %v1984_v59, %v1984_v59  ;;  %v770_v20 = vrot.slane %v3777_v34, %v769_v26  ;;  %v2145_v57 = vrot.slane %v3735_v37, %v3782_v36 }
0x10e7   :  { %v2286_v32 = vrot.slane %v3743_v51, %v769_v26 }
0x10e8   :  { %v1993_v6 = vadd.f32 %v1991_v60, %v1981_v52  ;;  %v1990_v10 = vmul.f32 %v1988_v4, %v1984_v59 }
0x10ea   :  { %v1995_v11 = vmul.f32 0.7978846, %v1993_v6  ;;  %v1992_v12 = vmul.f32 0.044715, %v1990_v10  ;;  %v2527_v6 = vld [vmem:[#allocation12 + $0x18] ss:$0 sm:$0xff] }
0x10ec   :  { %3189 = vtanh.f32 %v1995_v11  ;;  %v1994_v15 = vadd.f32 %v1992_v12, %v1984_v59  ;;  %v2151_v11 = vrot.slane %v3735_v37, %v769_v26 }
0x10ee   :  { %v1996_v16 = vmul.f32 0.7978846, %v1994_v15  ;;  %v784_v15 = vadd.f32 %v2527_v6, %v3574_v63 }
0x10f0   :  { %3191 = vtanh.f32 %v1996_v16  ;;  %v788_v36 = vrot.slane %v784_v15, %v3747_v56  ;;  %v792_v37 = vrot.slane %v784_v15, %v3523_v2 }
0x10f9   :  { %v3190_v62 = vpop.eup %3189 }
0x10fa   :  { %v1999_v25 = vadd.f32 1.0, %v3190_v62 }
0x10fc   :  { %v2001_v9 = vmul.f32 0.5, %v1999_v25 }
0x10fd   :  { %v3192_v17 = vpop.eup %3191 }
0x10fe   :  { %v2000_v61 = vadd.f32 1.0, %v3192_v17  ;;  %v2003_v18 = vmul.f32 %v2001_v9, %v1981_v52 }
0x1100   :  { %v2002_v7 = vmul.f32 0.5, %v2000_v61 }
0x1102   :  { %v2004_v13 = vmul.f32 %v2002_v7, %v1984_v59  ;;  %v771_v59 = vadd.f32 %v770_v20, %v3570_v27 }
0x1104   :  { %v2005_v3 = vpack.c.bf16 %v2004_v13, %v2003_v18  ;;  %v775_v10 = vrot.slane %v771_v59, %v3747_v56  ;;  %v779_v25 = vrot.slane %v771_v59, %v3523_v2 }
0x1106   :  { %2938 = vmatmul.mubr.bf16.vlgmr.msra.gmra.mxu1 %v2005_v3  ;;  %v2154_v27 = vadd.f32 1.0, %v775_v10  ;;  %v2155_v18 = vadd.f32 1.0, %v779_v25  ;;  %v2318_v25 = vrot.slane %v3743_v51, %v3747_v56 }
0x1107   :  { %2977 = vmatprep.mubr.msk.bf16.mxu1 %vm3373_vm0, %v3372_v1 }
0x11c6   :  { %v2109_v22 = vpop.f32.mrf.mxu1 }
0x11c7   :  { %v2110_v21 = vadd.f32 %v2109_v22, %v2026_v19 }
0x11c8   :  { %v2939_v23 = vpop.f32.mrf.mxu1 }
0x11c9   :  { %2116 = vadd.xlane.f32.xlu1 %v2110_v21  ;;  %v2122_v0 = vmul.f32 %v2110_v21, %v2110_v21 }
0x11ca   :  { %v2112_v24 = vpop.f32.mrf.mxu1 }
0x11cb   :  { %v3831_v54 = vadd.f32 %v2112_v24, %v2026_v19 }
0x11cc   :  { %v2940_v28 = vpop.f32.mrf.mxu1 }
0x11cd   :  { %2124 = vadd.xlane.f32.xlu1 %v2122_v0  ;;  %2118 = vadd.xlane.f32.xlu0 %v3831_v54  ;;  %v2123_v29 = vmul.f32 %v3831_v54, %v3831_v54 }
0x11d1   :  { %2126 = vadd.xlane.f32.xlu0 %v2123_v29 }
0x1252   :  { %v2117_v8 = vpop.xlane.xlu1 %2116 }
0x1253   :  { %v2120_v53 = vmul.f32 0.0078125, %v2117_v8 }
0x1255   :  { %v2132_v39 = vmul.f32 %v2120_v53, %v2120_v53  ;;  %v2130_v60 = vsub.f32 %v2110_v21, %v2120_v53 }
0x1256   :  { %v2125_v42 = vpop.xlane.xlu1 %2124  ;;  %v2119_v44 = vpop.xlane.xlu0 %2118 }
0x1257   :  { %v2128_v41 = vmul.f32 0.0078125, %v2125_v42  ;;  %v2121_v43 = vmul.f32 0.0078125, %v2119_v44 }
0x1259   :  { %v2134_v47 = vsub.f32 %v2128_v41, %v2132_v39  ;;  %v2133_v50 = vmul.f32 %v2121_v43, %v2121_v43  ;;  %v2131_v5 = vsub.f32 %v3831_v54, %v2121_v43  ;;  %v3123_v43 = vld [vmem:[#allocation9 + $0x1b8] sm:$0xff]  }
0x125a   :  { %v2127_v48 = vpop.xlane.xlu0 %2126  ;;  %2962 = vmatpush3.bf16.msra.mxu1 %v3123_v43 }
0x125b   :  { %v2136_v49 = vadd.f32 1e-05, %v2134_v47  ;;  %v2129_v52 = vmul.f32 0.0078125, %v2127_v48  ;;  %2963 = vmatprep.subr.bf16.mxu1 %v3372_v1  ;;  %v3124_v47 = vld [vmem:[#allocation9 + $0x1b0] sm:$0xff]   ;;  %v3127_v48 = vld [vmem:[#allocation9 + $0x198] sm:$0xff]  }
0x125d   :  { %3193 = vrsqrt.f32 %v2136_v49  ;;  %v2135_v55 = vsub.f32 %v2129_v52, %v2133_v50  ;;  %v3128_v49 = vld [vmem:[#allocation9 + $0x190] sm:$0xff]   ;;  %v3129_v50 = vld [vmem:[#allocation9 + $0x188] sm:$0xff]   ;;  %v3130_v52 = vld [vmem:[#allocation9 + $0x180] sm:$0xff]  }
0x125e   :  { %2964 = vmatpush3.bf16.msra.mxu1 %v3124_v47 }
0x125f   :  { %v2137_v58 = vadd.f32 1e-05, %v2135_v55  ;;  %2965 = vmatprep.subr.bf16.mxu1 %v3372_v1 }
0x1261   :  { %3195 = vrsqrt.f32 %v2137_v58 }
0x126a   :  { %v3194_v4 = vpop.eup %3193 }
0x126b   :  { %v2140_v12 = vmul.f32 %v3194_v4, %v2130_v60 }
0x126d   :  { %v2146_v16 = vmul.f32 %v2145_v57, %v2140_v12 }
0x126e   :  { %v3196_v62 = vpop.eup %3195 }
0x126f   :  { %v2141_v17 = vmul.f32 %v3196_v62, %v2131_v5  ;;  %v2152_v9 = vadd.f32 %v2151_v11, %v2146_v16 }
0x1271   :  { %v2147_v61 = vmul.f32 %v2145_v57, %v2141_v17  ;;  %v2156_v7 = vmul.f32 %v2154_v27, %v2152_v9 }
0x1273   :  { %v2153_v13 = vadd.f32 %v2151_v11, %v2147_v61  ;;  %v2158_v3 = vadd.f32 %v2156_v7, %v788_v36  ;;  %v2324_v61 = vrot.slane %v3743_v51, %v3523_v2 }
0x1275   :  { %v2157_v19 = vmul.f32 %v2155_v18, %v2153_v13  ;;  %v2590_v63 = vmul.f32 -1.442695, %v2158_v3 }
0x1277   :  { %v2159_v22 = vadd.f32 %v2157_v19, %v792_v37  ;;  %3197 = vpow2.f32 %v2590_v63  ;;  %v2348_v37 = vrot.slane %v3777_v34, %v3747_v56 }
0x1279   :  { %v2591_v21 = vmul.f32 -1.442695, %v2159_v22 }
0x127b   :  { %3199 = vpow2.f32 %v2591_v21 }
0x1284   :  { %v3198_v23 = vpop.eup %3197 }
0x1285   :  { %v2166_v24 = vadd.f32 1.0, %v3198_v23 }
0x1287   :  { %3201 = vrcp.f32 %v2166_v24 }
0x1288   :  { %v3200_v54 = vpop.eup %3199 }
0x1289   :  { %v2167_v0 = vadd.f32 1.0, %v3200_v54 }
0x128b   :  { %3203 = vrcp.f32 %v2167_v0 }
0x1294   :  { %v3202_v28 = vpop.eup %3201 }
0x1295   :  { %v2172_v30 = vmul.f32 %v3202_v28, %v2158_v3 }
0x1298   :  { %v3204_v29 = vpop.eup %3203 }
0x1299   :  { %v2173_v40 = vmul.f32 %v3204_v29, %v2159_v22 }
0x129b   :  { %v2174_v31 = vpack.c.bf16 %v2173_v40, %v2172_v30 }
0x129d   :  { %2958 = vmatmul.mubr.bf16.vlgmr.msra.gmra.mxu0 %v2174_v31 }
0x135d   :  { %v2274_v46 = vpop.f32.mrf.mxu0 }
0x135e   :  { %v2281_v33 = vadd.f32 %v2274_v46, %v3809_v14  ;;  %v3125_v14 = vld [vmem:[#allocation9 + $0x1a8] sm:$0xff]  }
0x135f   :  { %v2959_v45 = vpop.f32.mrf.mxu0  ;;  %2966 = vmatpush3.bf16.msra.mxu1 %v3125_v14 }
0x1360   :  { %v2287_v35 = vadd.f32 %v2286_v32, %v2281_v33  ;;  %2967 = vmatprep.subr.bf16.mxu1 %v3372_v1 }
0x1361   :  { %v2277_v8 = vpop.f32.mrf.mxu0 }
0x1362   :  { %v2282_v53 = vadd.f32 %v2277_v8, %v3811_v38  ;;  %2289 = vadd.xlane.f32.xlu1 %v2287_v35  ;;  %v2295_v39 = vmul.f32 %v2287_v35, %v2287_v35  ;;  %v3126_v38 = vld [vmem:[#allocation9 + $0x1a0] sm:$0xff]  }
0x1363   :  { %v2960_v42 = vpop.f32.mrf.mxu0  ;;  %2968 = vmatpush3.bf16.msra.mxu1 %v3126_v38 }
0x1364   :  { %v2288_v44 = vadd.f32 %v2286_v32, %v2282_v53  ;;  %2969 = vmatprep.subr.bf16.mxu1 %v3372_v1 }
0x1366   :  { %2297 = vadd.xlane.f32.xlu1 %v2295_v39  ;;  %2291 = vadd.xlane.f32.xlu0 %v2288_v44  ;;  %v2296_v41 = vmul.f32 %v2288_v44, %v2288_v44 }
0x1367   :  { %2970 = vmatpush3.bf16.msra.mxu1 %v3127_v48 }
0x1368   :  { %2971 = vmatprep.subr.bf16.mxu1 %v3372_v1 }
0x136a   :  { %2299 = vadd.xlane.f32.xlu0 %v2296_v41 }
0x136b   :  { %2972 = vmatpush3.bf16.msra.mxu1 %v3128_v49 }
0x136c   :  { %2973 = vmatprep.subr.bf16.mxu1 %v3372_v1 }
0x136f   :  { %2974 = vmatpush3.bf16.msra.mxu1 %v3129_v50 }
0x1370   :  { %2975 = vmatprep.subr.bf16.mxu1 %v3372_v1 }
0x1373   :  { %2976 = vmatpush3.bf16.msra.mxu1 %v3130_v52 }
0x13eb   :  { %v2290_v55 = vpop.xlane.xlu1 %2289 }
0x13ec   :  { %v2293_v26 = vmul.f32 0.0078125, %v2290_v55 }
0x13ee   :  { %v2305_v59 = vmul.f32 %v2293_v26, %v2293_v26  ;;  %v2303_v16 = vsub.f32 %v2287_v35, %v2293_v26 }
0x13ef   :  { %v2298_v58 = vpop.xlane.xlu1 %2297  ;;  %v2292_v20 = vpop.xlane.xlu0 %2291 }
0x13f0   :  { %v2301_v57 = vmul.f32 0.0078125, %v2298_v58  ;;  %v2294_v60 = vmul.f32 0.0078125, %v2292_v20 }
0x13f2   :  { %v2307_v4 = vsub.f32 %v2301_v57, %v2305_v59  ;;  %v2306_v11 = vmul.f32 %v2294_v60, %v2294_v60  ;;  %v2304_v27 = vsub.f32 %v2288_v44, %v2294_v60 }
0x13f3   :  { %v2300_v6 = vpop.xlane.xlu0 %2299 }
0x13f4   :  { %v2309_v10 = vadd.f32 1e-05, %v2307_v4  ;;  %v2302_v12 = vmul.f32 0.0078125, %v2300_v6 }
0x13f6   :  { %3205 = vrsqrt.f32 %v2309_v10  ;;  %v2308_v15 = vsub.f32 %v2302_v12, %v2306_v11 }
0x13f8   :  { %v2310_v5 = vadd.f32 1e-05, %v2308_v15 }
0x13fa   :  { %3207 = vrsqrt.f32 %v2310_v5 }
0x1403   :  { %v3206_v62 = vpop.eup %3205 }
0x1404   :  { %v2313_v1 = vmul.f32 %v3206_v62, %v2303_v16 }
0x1406   :  { %v2319_v36 = vmul.f32 %v2318_v25, %v2313_v1 }
0x1407   :  { %v3208_v17 = vpop.eup %3207 }
0x1408   :  { %v2314_v9 = vmul.f32 %v3208_v17, %v2304_v27  ;;  %v2325_v18 = vadd.f32 %v2324_v61, %v2319_v36 }
0x140a   :  { %v2320_v7 = vmul.f32 %v2318_v25, %v2314_v9 }
0x140c   :  { %v2326_v13 = vadd.f32 %v2324_v61, %v2320_v7 }
0x140e   :  { %v2327_v3 = vpack.c.bf16 %v2326_v13, %v2325_v18 }
0x1410   :  { %2978 = vmatmul.mubr.bf16.vlgmr.msra.gmra.mxu1 %v2327_v3 }
0x14d0   :  { %v2431_v19 = vpop.f32.mrf.mxu1 }
0x14d1   :  { %v2432_v63 = vadd.f32 %v2431_v19, %v2348_v37 }
0x14d2   :  { %v2979_v22 = vpop.f32.mrf.mxu1 }
0x14d3   :  { %v2608_v21 = vmul.f32 -1.442695, %v2432_v63 }
0x14d4   :  { %v2434_v23 = vpop.f32.mrf.mxu1 }
0x14d5   :  { %3209 = vpow2.f32 %v2608_v21  ;;  %v2435_v24 = vadd.f32 %v2434_v23, %v2348_v37 }
0x14d6   :  { %v2980_v54 = vpop.f32.mrf.mxu1 }
0x14d7   :  { %v2609_v0 = vmul.f32 -1.442695, %v2435_v24 }
0x14d9   :  { %3211 = vpow2.f32 %v2609_v0 }
0x14e2   :  { %v3210_v28 = vpop.eup %3209 }
0x14e3   :  { %v2444_v2 = vadd.f32 1.0, %v3210_v28 }
0x14e5   :  { %3213 = vrcp.f32 %v2444_v2 }
0x14e6   :  { %v3212_v51 = vpop.eup %3211 }
0x14e7   :  { %v2445_v29 = vadd.f32 1.0, %v3212_v51 }
0x14e9   :  { %3215 = vrcp.f32 %v2445_v29 }
0x14f2   :  { %v3214_v30 = vpop.eup %3213 }
0x14f3   :  { %2450 = vst [vmem:[#allocation13] sm:$0xff] %v3214_v30 }
0x14f6   :  { %v3216_v56 = vpop.eup %3215 }
0x14f7   :  { %2451 = vst [vmem:[#allocation13 + $0x8] sm:$0xff] %v3216_v56 }
0x14f8   :  { %3341 = shalt.err (!%p3338_p6)
}
0x14f9   :  { %2463 = dma.vmem_to_hbm [thread:$0]  %s2458_s10, 256, %s3883_s6, [#allocation4], %s3362_s26, %s3362_s26, %s3363_s27  }
0x14fa   :  { %3358 = dma.done.wait [#allocation4], 256  }
0x14fb   :  { %3359 = vsyncadd [#allocation4], 4294967040 }
0x14fc   :  { %2467 = vsyncpa [#allocation3], 1 }
0x14fd   :  { %2468 = vsyncpa [#allocation8], 1 }
0x14fe   :  { %2469 = vsyncpa [#allocation11], 1 }
0x14ff   :  { %2470 = vsyncpa [#allocation4], 1 }
0x1500   :  { %2471 = vsyncpa [#allocation5], 1 }

</bundles_post_ra>
